<compile_context>
chip_gen: v6e
topology: v6e:2x2x1
jax: 0.10.0
libtpu: 0.0.40
codegen_flags: <defaults>
</compile_context>

<pallas_src>
import functools
import numpy as np
import jax
import jax.numpy as jnp
from jax.experimental import pallas as pl
from jax.experimental.pallas import tpu as pltpu

# ---------------- small config consistent with the module ----------------
D_DOCS, P_PARS, S_SENTS, T_WORDS = 2, 2, 4, 8
VOCAB      = 100
EMB_DIM    = 16          # params['embedding_dim']
LSTM_DIM   = 32          # params['lstm_dim']
HID_DIM    = 32          # params['hidden_dim']
MAX_LEN    = 50          # self.max_len == hidden_layer input features
NUM_LABELS = 1           # task == 'class'
BN_EPS     = 1e-5
COS_EPS    = 1e-8
OUT_LANES  = 128         # lane-dense output row width


# ============================ fused Pallas kernel ============================

def _fused_kernel(x_ref, wih_ref, whh_ref, wb_ref,
                  sih_ref, shh_ref, sb_ref,
                  w1_ref, b1_ref, gam_ref, bet_ref, mu_ref, var_ref,
                  w2_ref, b2_ref,
                  out_ref, feat_sc, row_sc, *, n_sents):
    """One document per grid step: word-LSTM -> sent-LSTM -> cosines -> head."""
    f32 = jnp.float32
    T, BW, E = x_ref.shape[1], x_ref.shape[2], x_ref.shape[3]   # words, P*S, emb
    L = whh_ref.shape[0]
    n_par = BW // n_sents

    def lstm_cell(gates, c_prev):
        # PyTorch gate order i, f, g, o; gates is (batch, 4L) = one lane-full vreg.
        i_g = jax.nn.sigmoid(gates[:, 0 * L:1 * L])
        f_g = jax.nn.sigmoid(gates[:, 1 * L:2 * L])
        g_g = jnp.tanh(gates[:, 2 * L:3 * L])
        o_g = jax.nn.sigmoid(gates[:, 3 * L:4 * L])
        c_new = f_g * c_prev + i_g * g_g
        h_new = o_g * jnp.tanh(c_new)
        return h_new, c_new

    # ---- word LSTM over this doc's BW sentences (time-major, zero init state) ----
    xw = x_ref[0]                                              # (T, BW, E)
    # hoisted input projection: one (T*BW, E) @ (E, 4L) MXU matmul for all steps
    gx = jnp.dot(xw.reshape(T * BW, E), wih_ref[...],
                 preferred_element_type=f32) + wb_ref[...]     # (T*BW, 4L)
    whh = whh_ref[...]
    h = jnp.zeros((BW, L), f32)
    c = jnp.zeros((BW, L), f32)
    for t in range(T):                                         # fully unrolled recurrence
        gates = gx[t * BW:(t + 1) * BW, :] + jnp.dot(h, whh,
                                                     preferred_element_type=f32)
        h, c = lstm_cell(gates, c)
    sent_vecs = h                                              # (BW, L), rows ordered (p, s)

    # ---- sentence LSTM over each paragraph's S sentence vectors (batch = P) ----
    gxs = jnp.dot(sent_vecs, sih_ref[...],
                  preferred_element_type=f32) + sb_ref[...]    # (BW, 4L), hoisted
    shh = shh_ref[...]
    h2 = jnp.zeros((n_par, L), f32)
    c2 = jnp.zeros((n_par, L), f32)
    for s in range(n_sents):                                   # fully unrolled
        xg = jnp.concatenate(
            [gxs[p * n_sents + s: p * n_sents + s + 1, :] for p in range(n_par)],
            axis=0)                                            # (P, 4L)
        gates = xg + jnp.dot(h2, shh, preferred_element_type=f32)
        h2, c2 = lstm_cell(gates, c2)
    par_vecs = h2                                              # (P, L)

    # ---- adjacent cosine similarities (pair index along sublanes) ----
    def adj_cos(v):                                            # (N, L) -> (N-1, 1)
        a, b = v[:-1, :], v[1:, :]
        dot = jnp.sum(a * b, axis=-1, keepdims=True)
        na = jnp.sqrt(jnp.sum(a * a, axis=-1, keepdims=True))
        nb = jnp.sqrt(jnp.sum(b * b, axis=-1, keepdims=True))
        # torch.nn.CosineSimilarity clamps each norm separately with eps
        return dot / (jnp.maximum(na, COS_EPS) * jnp.maximum(nb, COS_EPS))

    cos_sent = adj_cos(sent_vecs)                              # (BW-1, 1)
    cos_par = adj_cos(par_vecs)                                # (P-1, 1)

    # ---- (max_len, 2) feature matrix: col 0 = sentence stream, col 1 = paragraph stream
    #      (zero fill replicates np.zeros(self.max_len) padding) ----
    # TODO(synk): single-sentence / single-paragraph docs (original appends 1.0) not modelled.
    feat_sc[...] = jnp.zeros_like(feat_sc)
    feat_sc[0:BW - 1, 0:1] = cos_sent
    feat_sc[0:n_par - 1, 1:2] = cos_par
    feat = feat_sc[...]                                        # (max_len, 2)

    # ---- head, transposed form: predict(dropout(bn(relu(hidden(x))))) ----
    # TODO(synk): eval-mode BN (running stats) and identity dropout only;
    # training-mode batch statistics / stochastic dropout not modelled.
    hdn = jnp.dot(w1_ref[...], feat, preferred_element_type=f32) + b1_ref[...]   # (H, 2)
    hdn = jnp.maximum(hdn, 0.0)
    hdn = ((hdn - mu_ref[...]) / jnp.sqrt(var_ref[...] + BN_EPS)
           * gam_ref[...] + bet_ref[...])
    pred = jnp.dot(w2_ref[...], hdn, preferred_element_type=f32) + b2_ref[...]   # (1, 2)

    # lane-dense output row: lane 0 = sent prediction, lane 1 = par prediction
    row_sc[...] = jnp.zeros_like(row_sc)
    row_sc[0:1, 0:2] = pred
    out_ref[0] = row_sc[...]


# ============================ parameters ============================

def _xavier_uniform(key, shape):
    fan_out, fan_in = shape
    bound = float(np.sqrt(6.0 / (fan_in + fan_out)))
    return jax.random.uniform(key, shape, jnp.float32, -bound, bound)


def _lstm_uniform(key, shape, hidden):
    bound = 1.0 / float(np.sqrt(hidden))
    return jax.random.uniform(key, shape, jnp.float32, -bound, bound)


def init_params(key):
    ks = jax.random.split(key, 11)
    L = LSTM_DIM
    p = {}
    p['embeddings'] = jax.random.normal(ks[0], (VOCAB, EMB_DIM), jnp.float32) * 0.1
    # word_lstm = nn.LSTM(embedding_dim, lstm_dim)   (PyTorch default uniform init)
    p['w_wih'] = _lstm_uniform(ks[1], (4 * L, EMB_DIM), L)
    p['w_whh'] = _lstm_uniform(ks[2], (4 * L, L), L)
    p['w_bih'] = _lstm_uniform(ks[3], (4 * L,), L)
    p['w_bhh'] = _lstm_uniform(ks[4], (4 * L,), L)
    # sent_lstm = nn.LSTM(lstm_dim, lstm_dim)
    p['s_wih'] = _lstm_uniform(ks[5], (4 * L, L), L)
    p['s_whh'] = _lstm_uniform(ks[6], (4 * L, L), L)
    p['s_bih'] = _lstm_uniform(ks[7], (4 * L,), L)
    p['s_bhh'] = _lstm_uniform(ks[8], (4 * L,), L)
    # hidden_layer = Linear(50, hidden_dim); predict_layer = Linear(hidden_dim, 1)
    p['hid_w'] = _xavier_uniform(ks[9], (HID_DIM, MAX_LEN))
    p['hid_b'] = jnp.zeros((HID_DIM,), jnp.float32)
    p['pred_w'] = _xavier_uniform(ks[10], (NUM_LABELS, HID_DIM))
    p['pred_b'] = jnp.zeros((NUM_LABELS,), jnp.float32)
    # BatchNorm1d(hidden_dim) default buffers/affine
    p['bn_gamma'] = jnp.ones((HID_DIM,), jnp.float32)
    p['bn_beta'] = jnp.zeros((HID_DIM,), jnp.float32)
    p['bn_mean'] = jnp.zeros((HID_DIM,), jnp.float32)
    p['bn_var'] = jnp.ones((HID_DIM,), jnp.float32)
    return p


# ============================ forward (Pallas) ============================

def forward(params, token_ids):
    D, P, S, T = token_ids.shape
    E, L, H = EMB_DIM, LSTM_DIM, HID_DIM

    # embedding lookup (glue)
    emb = jnp.take(params['embeddings'], token_ids.reshape(-1), axis=0)
    emb = emb.reshape(D, P, S, T, E)
    # per-doc, time-major word-LSTM input; batch rows ordered (p, s)
    # TODO(synk): pack_padded_sequence with variable sentence lengths and the
    # original_index re-sorting gather are not modelled (lengths == T, identity order).
    x_word = emb.transpose(0, 3, 1, 2, 4).reshape(D, T, P * S, E)

    w_bias = (params['w_bih'] + params['w_bhh']).reshape(1, 4 * L)
    s_bias = (params['s_bih'] + params['s_bhh']).reshape(1, 4 * L)

    kernel = functools.partial(_fused_kernel, n_sents=S)

    out = pl.pallas_call(
        kernel,
        out_shape=jax.ShapeDtypeStruct((D, 1, OUT_LANES), jnp.float32),
        grid_spec=pltpu.PrefetchScalarGridSpec(
            num_scalar_prefetch=0,
            grid=(D,),
            in_specs=[
                pl.BlockSpec((1, T, P * S, E), lambda d: (d, 0, 0, 0)),   # words
                pl.BlockSpec((E, 4 * L), lambda d: (0, 0)),               # word W_ih^T
                pl.BlockSpec((L, 4 * L), lambda d: (0, 0)),               # word W_hh^T
                pl.BlockSpec((1, 4 * L), lambda d: (0, 0)),               # word bias
                pl.BlockSpec((L, 4 * L), lambda d: (0, 0)),               # sent W_ih^T
                pl.BlockSpec((L, 4 * L), lambda d: (0, 0)),               # sent W_hh^T
                pl.BlockSpec((1, 4 * L), lambda d: (0, 0)),               # sent bias
                pl.BlockSpec((H, MAX_LEN), lambda d: (0, 0)),             # hidden W
                pl.BlockSpec((H, 1), lambda d: (0, 0)),                   # hidden b
                pl.BlockSpec((H, 1), lambda d: (0, 0)),                   # bn gamma
                pl.BlockSpec((H, 1), lambda d: (0, 0)),                   # bn beta
                pl.BlockSpec((H, 1), lambda d: (0, 0)),                   # bn mean
                pl.BlockSpec((H, 1), lambda d: (0, 0)),                   # bn var
                pl.BlockSpec((NUM_LABELS, H), lambda d: (0, 0)),          # predict W
                pl.BlockSpec((1, NUM_LABELS), lambda d: (0, 0)),          # predict b
            ],
            out_specs=pl.BlockSpec((1, 1, OUT_LANES), lambda d: (d, 0, 0)),
            scratch_shapes=[pltpu.VMEM((MAX_LEN, 2), jnp.float32),        # feature cols
                            pltpu.VMEM((1, OUT_LANES), jnp.float32)],     # output row
        ),
        # docs are independent -> both v7x TensorCores get work; harmless elsewhere
        compiler_params=pltpu.CompilerParams(dimension_semantics=("parallel",)),
    )(x_word,
      params['w_wih'].T, params['w_whh'].T, w_bias,
      params['s_wih'].T, params['s_whh'].T, s_bias,
      params['hid_w'], params['hid_b'].reshape(H, 1),
      params['bn_gamma'].reshape(H, 1), params['bn_beta'].reshape(H, 1),
      params['bn_mean'].reshape(H, 1), params['bn_var'].reshape(H, 1),
      params['pred_w'], params['pred_b'].reshape(1, NUM_LABELS))

    preds = out[:, 0, :]
    # TODO(synk): the original returns a pandas DataFrame; returning arrays instead.
    return {'sent': preds[:, 0], 'par': preds[:, 1]}


# ============================ pure-JAX reference ============================

def _lstm_ref(x, w_ih, w_hh, b_ih, b_hh):
    T, B, _ = x.shape
    L = w_hh.shape[1]
    h = jnp.zeros((B, L), jnp.float32)
    c = jnp.zeros((B, L), jnp.float32)
    for t in range(T):
        gates = x[t] @ w_ih.T + h @ w_hh.T + b_ih + b_hh
        i = jax.nn.sigmoid(gates[:, :L])
        f = jax.nn.sigmoid(gates[:, L:2 * L])
        g = jnp.tanh(gates[:, 2 * L:3 * L])
        o = jax.nn.sigmoid(gates[:, 3 * L:4 * L])
        c = f * c + i * g
        h = o * jnp.tanh(c)
    return h


def forward_ref(params, token_ids):
    D, P, S, T = token_ids.shape
    E, L = EMB_DIM, LSTM_DIM
    emb = params['embeddings'][token_ids.reshape(-1)].reshape(D, P, S, T, E)
    x_word = emb.reshape(D * P * S, T, E).transpose(1, 0, 2)
    sent_vecs = _lstm_ref(x_word, params['w_wih'], params['w_whh'],
                          params['w_bih'], params['w_bhh'])
    x_sent = sent_vecs.reshape(D * P, S, L).transpose(1, 0, 2)
    par_vecs = _lstm_ref(x_sent, params['s_wih'], params['s_whh'],
                         params['s_bih'], params['s_bhh'])

    def cos_adj(v):
        a, b = v[:, :-1], v[:, 1:]
        dot = jnp.sum(a * b, -1)
        na = jnp.sqrt(jnp.sum(a * a, -1))
        nb = jnp.sqrt(jnp.sum(b * b, -1))
        return dot / (jnp.maximum(na, COS_EPS) * jnp.maximum(nb, COS_EPS))

    cos_sent = cos_adj(sent_vecs.reshape(D, P * S, L))
    cos_par = cos_adj(par_vecs.reshape(D, P, L))
    gc_sent = jnp.pad(cos_sent, ((0, 0), (0, MAX_LEN - cos_sent.shape[1])))
    gc_par = jnp.pad(cos_par, ((0, 0), (0, MAX_LEN - cos_par.shape[1])))

    def head(x):
        h = jnp.maximum(x @ params['hid_w'].T + params['hid_b'], 0.0)
        h = ((h - params['bn_mean']) / jnp.sqrt(params['bn_var'] + BN_EPS)
             * params['bn_gamma'] + params['bn_beta'])
        return h @ params['pred_w'].T + params['pred_b']

    return {'sent': head(gc_sent).reshape(-1), 'par': head(gc_par).reshape(-1)}


# ============================ main ============================

if __name__ == "__main__":
    key = jax.random.PRNGKey(0)
    pkey, dkey = jax.random.split(key)
    params = init_params(pkey)
    token_ids = jax.random.randint(dkey, (D_DOCS, P_PARS, S_SENTS, T_WORDS), 0, VOCAB,
                                   dtype=jnp.int32)

    out = forward(params, token_ids)
    out = {k: jax.block_until_ready(v) for k, v in out.items()}

    ref = forward_ref(params, token_ids)
    for k in ('sent', 'par'):
        np.testing.assert_allclose(np.asarray(out[k]), np.asarray(ref[k]),
                                   rtol=5e-2, atol=5e-2)
    print("KERNEL_OK")
</pallas_src>

<mosaic_0001>
module attributes {stable_mosaic.version = 11 : i64} {
  func.func @_fused_kernel(%arg0: i32, %arg1: memref<1x8x8x16xf32, #tpu.memory_space<vmem>>, %arg2: memref<16x128xf32, #tpu.memory_space<vmem>>, %arg3: memref<32x128xf32, #tpu.memory_space<vmem>>, %arg4: memref<1x128xf32, #tpu.memory_space<vmem>>, %arg5: memref<32x128xf32, #tpu.memory_space<vmem>>, %arg6: memref<32x128xf32, #tpu.memory_space<vmem>>, %arg7: memref<1x128xf32, #tpu.memory_space<vmem>>, %arg8: memref<32x50xf32, #tpu.memory_space<vmem>>, %arg9: memref<32x1xf32, #tpu.memory_space<vmem>>, %arg10: memref<32x1xf32, #tpu.memory_space<vmem>>, %arg11: memref<32x1xf32, #tpu.memory_space<vmem>>, %arg12: memref<32x1xf32, #tpu.memory_space<vmem>>, %arg13: memref<32x1xf32, #tpu.memory_space<vmem>>, %arg14: memref<1x32xf32, #tpu.memory_space<vmem>>, %arg15: memref<1x1xf32, #tpu.memory_space<vmem>>, %arg16: memref<1x1x128xf32, #tpu.memory_space<vmem>>, %arg17: memref<50x2xf32, #tpu.memory_space<vmem>>, %arg18: memref<1x128xf32, #tpu.memory_space<vmem>>) attributes {dimension_semantics = [#tpu.dimension_semantics<parallel>], iteration_bounds = array<i64: 2>, scalar_prefetch = 0 : i64, scratch_operands = 2 : i64, tpu.core_type = #tpu.core_type<tc>, window_params = [{transform_indices = @transform_0, window_bounds = array<i64: 1, 8, 8, 16>}, {pipeline_mode = #tpu.pipeline_mode<synchronous>, transform_indices = @transform_1, window_bounds = array<i64: 16, 128>}, {pipeline_mode = #tpu.pipeline_mode<synchronous>, transform_indices = @transform_2, window_bounds = array<i64: 32, 128>}, {pipeline_mode = #tpu.pipeline_mode<synchronous>, transform_indices = @transform_3, window_bounds = array<i64: 1, 128>}, {pipeline_mode = #tpu.pipeline_mode<synchronous>, transform_indices = @transform_4, window_bounds = array<i64: 32, 128>}, {pipeline_mode = #tpu.pipeline_mode<synchronous>, transform_indices = @transform_5, window_bounds = array<i64: 32, 128>}, {pipeline_mode = #tpu.pipeline_mode<synchronous>, transform_indices = @transform_6, window_bounds = array<i64: 1, 128>}, {pipeline_mode = #tpu.pipeline_mode<synchronous>, transform_indices = @transform_7, window_bounds = array<i64: 32, 50>}, {pipeline_mode = #tpu.pipeline_mode<synchronous>, transform_indices = @transform_8, window_bounds = array<i64: 32, 1>}, {pipeline_mode = #tpu.pipeline_mode<synchronous>, transform_indices = @transform_9, window_bounds = array<i64: 32, 1>}, {pipeline_mode = #tpu.pipeline_mode<synchronous>, transform_indices = @transform_10, window_bounds = array<i64: 32, 1>}, {pipeline_mode = #tpu.pipeline_mode<synchronous>, transform_indices = @transform_11, window_bounds = array<i64: 32, 1>}, {pipeline_mode = #tpu.pipeline_mode<synchronous>, transform_indices = @transform_12, window_bounds = array<i64: 32, 1>}, {pipeline_mode = #tpu.pipeline_mode<synchronous>, transform_indices = @transform_13, window_bounds = array<i64: 1, 32>}, {pipeline_mode = #tpu.pipeline_mode<synchronous>, transform_indices = @transform_14, window_bounds = array<i64: 1, 1>}, {transform_indices = @transform_15, window_bounds = array<i64: 1, 1, 128>}]} {
    %c0 = arith.constant 0 : index
    %c0_0 = arith.constant 0 : index
    %c0_1 = arith.constant 0 : index
    %c0_2 = arith.constant 0 : index
    %0 = vector.load %arg1[%c0, %c0_0, %c0_1, %c0_2] : memref<1x8x8x16xf32, #tpu.memory_space<vmem>>, vector<1x8x8x16xf32>
    %1 = vector.shape_cast %0 : vector<1x8x8x16xf32> to vector<8x8x16xf32>
    %2 = vector.shape_cast %1 : vector<8x8x16xf32> to vector<64x16xf32>
    %c0_3 = arith.constant 0 : index
    %c0_4 = arith.constant 0 : index
    %3 = vector.load %arg2[%c0_3, %c0_4] : memref<16x128xf32, #tpu.memory_space<vmem>>, vector<16x128xf32>
    %cst = arith.constant dense<0.000000e+00> : vector<64x128xf32>
    %4 = tpu.matmul %2, %3, %cst {dimension_numbers = #tpu.dot_dimension_numbers<[1], [0], [0], [1], [0, 0, 1, 1], [], []>} : vector<64x16xf32>, vector<16x128xf32>, vector<64x128xf32> -> vector<64x128xf32>
    %c0_5 = arith.constant 0 : index
    %c0_6 = arith.constant 0 : index
    %5 = vector.load %arg4[%c0_5, %c0_6] : memref<1x128xf32, #tpu.memory_space<vmem>>, vector<1x128xf32>
    %6 = vector.broadcast %5 : vector<1x128xf32> to vector<64x128xf32>
    %7 = arith.addf %4, %6 : vector<64x128xf32>
    %c0_7 = arith.constant 0 : index
    %c0_8 = arith.constant 0 : index
    %8 = vector.load %arg3[%c0_7, %c0_8] : memref<32x128xf32, #tpu.memory_space<vmem>>, vector<32x128xf32>
    %cst_9 = arith.constant 0.000000e+00 : f32
    %9 = vector.broadcast %cst_9 : f32 to vector<8x32xf32>
    %cst_10 = arith.constant 0.000000e+00 : f32
    %10 = vector.broadcast %cst_10 : f32 to vector<8x32xf32>
    %11 = vector.extract_strided_slice %7 {offsets = [0, 0], sizes = [8, 128], strides = [1, 1]} : vector<64x128xf32> to vector<8x128xf32>
    %cst_11 = arith.constant dense<0.000000e+00> : vector<8x128xf32>
    %12 = tpu.matmul %9, %8, %cst_11 {dimension_numbers = #tpu.dot_dimension_numbers<[1], [0], [0], [1], [0, 0, 1, 1], [], []>} : vector<8x32xf32>, vector<32x128xf32>, vector<8x128xf32> -> vector<8x128xf32>
    %13 = arith.addf %11, %12 : vector<8x128xf32>
    %14 = vector.extract_strided_slice %13 {offsets = [0, 0], sizes = [8, 32], strides = [1, 1]} : vector<8x128xf32> to vector<8x32xf32>
    %15 = arith.negf %14 : vector<8x32xf32>
    %16 = math.exp %15 : vector<8x32xf32>
    %cst_12 = arith.constant 1.000000e+00 : f32
    %17 = vector.broadcast %cst_12 : f32 to vector<8x32xf32>
    %18 = arith.addf %17, %16 : vector<8x32xf32>
    %19 = arith.divf %17, %18 : vector<8x32xf32>
    %20 = vector.extract_strided_slice %13 {offsets = [0, 32], sizes = [8, 32], strides = [1, 1]} : vector<8x128xf32> to vector<8x32xf32>
    %21 = arith.negf %20 : vector<8x32xf32>
    %22 = math.exp %21 : vector<8x32xf32>
    %cst_13 = arith.constant 1.000000e+00 : f32
    %23 = vector.broadcast %cst_13 : f32 to vector<8x32xf32>
    %24 = arith.addf %23, %22 : vector<8x32xf32>
    %25 = arith.divf %23, %24 : vector<8x32xf32>
    %26 = vector.extract_strided_slice %13 {offsets = [0, 64], sizes = [8, 32], strides = [1, 1]} : vector<8x128xf32> to vector<8x32xf32>
    %27 = math.tanh %26 : vector<8x32xf32>
    %28 = vector.extract_strided_slice %13 {offsets = [0, 96], sizes = [8, 32], strides = [1, 1]} : vector<8x128xf32> to vector<8x32xf32>
    %29 = arith.negf %28 : vector<8x32xf32>
    %30 = math.exp %29 : vector<8x32xf32>
    %cst_14 = arith.constant 1.000000e+00 : f32
    %31 = vector.broadcast %cst_14 : f32 to vector<8x32xf32>
    %32 = arith.addf %31, %30 : vector<8x32xf32>
    %33 = arith.divf %31, %32 : vector<8x32xf32>
    %34 = arith.mulf %25, %10 : vector<8x32xf32>
    %35 = arith.mulf %19, %27 : vector<8x32xf32>
    %36 = arith.addf %34, %35 : vector<8x32xf32>
    %37 = math.tanh %36 : vector<8x32xf32>
    %38 = arith.mulf %33, %37 : vector<8x32xf32>
    %39 = vector.extract_strided_slice %7 {offsets = [8, 0], sizes = [8, 128], strides = [1, 1]} : vector<64x128xf32> to vector<8x128xf32>
    %cst_15 = arith.constant dense<0.000000e+00> : vector<8x128xf32>
    %40 = tpu.matmul %38, %8, %cst_15 {dimension_numbers = #tpu.dot_dimension_numbers<[1], [0], [0], [1], [0, 0, 1, 1], [], []>} : vector<8x32xf32>, vector<32x128xf32>, vector<8x128xf32> -> vector<8x128xf32>
    %41 = arith.addf %39, %40 : vector<8x128xf32>
    %42 = vector.extract_strided_slice %41 {offsets = [0, 0], sizes = [8, 32], strides = [1, 1]} : vector<8x128xf32> to vector<8x32xf32>
    %43 = arith.negf %42 : vector<8x32xf32>
    %44 = math.exp %43 : vector<8x32xf32>
    %cst_16 = arith.constant 1.000000e+00 : f32
    %45 = vector.broadcast %cst_16 : f32 to vector<8x32xf32>
    %46 = arith.addf %45, %44 : vector<8x32xf32>
    %47 = arith.divf %45, %46 : vector<8x32xf32>
    %48 = vector.extract_strided_slice %41 {offsets = [0, 32], sizes = [8, 32], strides = [1, 1]} : vector<8x128xf32> to vector<8x32xf32>
    %49 = arith.negf %48 : vector<8x32xf32>
    %50 = math.exp %49 : vector<8x32xf32>
    %cst_17 = arith.constant 1.000000e+00 : f32
    %51 = vector.broadcast %cst_17 : f32 to vector<8x32xf32>
    %52 = arith.addf %51, %50 : vector<8x32xf32>
    %53 = arith.divf %51, %52 : vector<8x32xf32>
    %54 = vector.extract_strided_slice %41 {offsets = [0, 64], sizes = [8, 32], strides = [1, 1]} : vector<8x128xf32> to vector<8x32xf32>
    %55 = math.tanh %54 : vector<8x32xf32>
    %56 = vector.extract_strided_slice %41 {offsets = [0, 96], sizes = [8, 32], strides = [1, 1]} : vector<8x128xf32> to vector<8x32xf32>
    %57 = arith.negf %56 : vector<8x32xf32>
    %58 = math.exp %57 : vector<8x32xf32>
    %cst_18 = arith.constant 1.000000e+00 : f32
    %59 = vector.broadcast %cst_18 : f32 to vector<8x32xf32>
    %60 = arith.addf %59, %58 : vector<8x32xf32>
    %61 = arith.divf %59, %60 : vector<8x32xf32>
    %62 = arith.mulf %53, %36 : vector<8x32xf32>
    %63 = arith.mulf %47, %55 : vector<8x32xf32>
    %64 = arith.addf %62, %63 : vector<8x32xf32>
    %65 = math.tanh %64 : vector<8x32xf32>
    %66 = arith.mulf %61, %65 : vector<8x32xf32>
    %67 = vector.extract_strided_slice %7 {offsets = [16, 0], sizes = [8, 128], strides = [1, 1]} : vector<64x128xf32> to vector<8x128xf32>
    %cst_19 = arith.constant dense<0.000000e+00> : vector<8x128xf32>
    %68 = tpu.matmul %66, %8, %cst_19 {dimension_numbers = #tpu.dot_dimension_numbers<[1], [0], [0], [1], [0, 0, 1, 1], [], []>} : vector<8x32xf32>, vector<32x128xf32>, vector<8x128xf32> -> vector<8x128xf32>
    %69 = arith.addf %67, %68 : vector<8x128xf32>
    %70 = vector.extract_strided_slice %69 {offsets = [0, 0], sizes = [8, 32], strides = [1, 1]} : vector<8x128xf32> to vector<8x32xf32>
    %71 = arith.negf %70 : vector<8x32xf32>
    %72 = math.exp %71 : vector<8x32xf32>
    %cst_20 = arith.constant 1.000000e+00 : f32
    %73 = vector.broadcast %cst_20 : f32 to vector<8x32xf32>
    %74 = arith.addf %73, %72 : vector<8x32xf32>
    %75 = arith.divf %73, %74 : vector<8x32xf32>
    %76 = vector.extract_strided_slice %69 {offsets = [0, 32], sizes = [8, 32], strides = [1, 1]} : vector<8x128xf32> to vector<8x32xf32>
    %77 = arith.negf %76 : vector<8x32xf32>
    %78 = math.exp %77 : vector<8x32xf32>
    %cst_21 = arith.constant 1.000000e+00 : f32
    %79 = vector.broadcast %cst_21 : f32 to vector<8x32xf32>
    %80 = arith.addf %79, %78 : vector<8x32xf32>
    %81 = arith.divf %79, %80 : vector<8x32xf32>
    %82 = vector.extract_strided_slice %69 {offsets = [0, 64], sizes = [8, 32], strides = [1, 1]} : vector<8x128xf32> to vector<8x32xf32>
    %83 = math.tanh %82 : vector<8x32xf32>
    %84 = vector.extract_strided_slice %69 {offsets = [0, 96], sizes = [8, 32], strides = [1, 1]} : vector<8x128xf32> to vector<8x32xf32>
    %85 = arith.negf %84 : vector<8x32xf32>
    %86 = math.exp %85 : vector<8x32xf32>
    %cst_22 = arith.constant 1.000000e+00 : f32
    %87 = vector.broadcast %cst_22 : f32 to vector<8x32xf32>
    %88 = arith.addf %87, %86 : vector<8x32xf32>
    %89 = arith.divf %87, %88 : vector<8x32xf32>
    %90 = arith.mulf %81, %64 : vector<8x32xf32>
    %91 = arith.mulf %75, %83 : vector<8x32xf32>
    %92 = arith.addf %90, %91 : vector<8x32xf32>
    %93 = math.tanh %92 : vector<8x32xf32>
    %94 = arith.mulf %89, %93 : vector<8x32xf32>
    %95 = vector.extract_strided_slice %7 {offsets = [24, 0], sizes = [8, 128], strides = [1, 1]} : vector<64x128xf32> to vector<8x128xf32>
    %cst_23 = arith.constant dense<0.000000e+00> : vector<8x128xf32>
    %96 = tpu.matmul %94, %8, %cst_23 {dimension_numbers = #tpu.dot_dimension_numbers<[1], [0], [0], [1], [0, 0, 1, 1], [], []>} : vector<8x32xf32>, vector<32x128xf32>, vector<8x128xf32> -> vector<8x128xf32>
    %97 = arith.addf %95, %96 : vector<8x128xf32>
    %98 = vector.extract_strided_slice %97 {offsets = [0, 0], sizes = [8, 32], strides = [1, 1]} : vector<8x128xf32> to vector<8x32xf32>
    %99 = arith.negf %98 : vector<8x32xf32>
    %100 = math.exp %99 : vector<8x32xf32>
    %cst_24 = arith.constant 1.000000e+00 : f32
    %101 = vector.broadcast %cst_24 : f32 to vector<8x32xf32>
    %102 = arith.addf %101, %100 : vector<8x32xf32>
    %103 = arith.divf %101, %102 : vector<8x32xf32>
    %104 = vector.extract_strided_slice %97 {offsets = [0, 32], sizes = [8, 32], strides = [1, 1]} : vector<8x128xf32> to vector<8x32xf32>
    %105 = arith.negf %104 : vector<8x32xf32>
    %106 = math.exp %105 : vector<8x32xf32>
    %cst_25 = arith.constant 1.000000e+00 : f32
    %107 = vector.broadcast %cst_25 : f32 to vector<8x32xf32>
    %108 = arith.addf %107, %106 : vector<8x32xf32>
    %109 = arith.divf %107, %108 : vector<8x32xf32>
    %110 = vector.extract_strided_slice %97 {offsets = [0, 64], sizes = [8, 32], strides = [1, 1]} : vector<8x128xf32> to vector<8x32xf32>
    %111 = math.tanh %110 : vector<8x32xf32>
    %112 = vector.extract_strided_slice %97 {offsets = [0, 96], sizes = [8, 32], strides = [1, 1]} : vector<8x128xf32> to vector<8x32xf32>
    %113 = arith.negf %112 : vector<8x32xf32>
    %114 = math.exp %113 : vector<8x32xf32>
    %cst_26 = arith.constant 1.000000e+00 : f32
    %115 = vector.broadcast %cst_26 : f32 to vector<8x32xf32>
    %116 = arith.addf %115, %114 : vector<8x32xf32>
    %117 = arith.divf %115, %116 : vector<8x32xf32>
    %118 = arith.mulf %109, %92 : vector<8x32xf32>
    %119 = arith.mulf %103, %111 : vector<8x32xf32>
    %120 = arith.addf %118, %119 : vector<8x32xf32>
    %121 = math.tanh %120 : vector<8x32xf32>
    %122 = arith.mulf %117, %121 : vector<8x32xf32>
    %123 = vector.extract_strided_slice %7 {offsets = [32, 0], sizes = [8, 128], strides = [1, 1]} : vector<64x128xf32> to vector<8x128xf32>
    %cst_27 = arith.constant dense<0.000000e+00> : vector<8x128xf32>
    %124 = tpu.matmul %122, %8, %cst_27 {dimension_numbers = #tpu.dot_dimension_numbers<[1], [0], [0], [1], [0, 0, 1, 1], [], []>} : vector<8x32xf32>, vector<32x128xf32>, vector<8x128xf32> -> vector<8x128xf32>
    %125 = arith.addf %123, %124 : vector<8x128xf32>
    %126 = vector.extract_strided_slice %125 {offsets = [0, 0], sizes = [8, 32], strides = [1, 1]} : vector<8x128xf32> to vector<8x32xf32>
    %127 = arith.negf %126 : vector<8x32xf32>
    %128 = math.exp %127 : vector<8x32xf32>
    %cst_28 = arith.constant 1.000000e+00 : f32
    %129 = vector.broadcast %cst_28 : f32 to vector<8x32xf32>
    %130 = arith.addf %129, %128 : vector<8x32xf32>
    %131 = arith.divf %129, %130 : vector<8x32xf32>
    %132 = vector.extract_strided_slice %125 {offsets = [0, 32], sizes = [8, 32], strides = [1, 1]} : vector<8x128xf32> to vector<8x32xf32>
    %133 = arith.negf %132 : vector<8x32xf32>
    %134 = math.exp %133 : vector<8x32xf32>
    %cst_29 = arith.constant 1.000000e+00 : f32
    %135 = vector.broadcast %cst_29 : f32 to vector<8x32xf32>
    %136 = arith.addf %135, %134 : vector<8x32xf32>
    %137 = arith.divf %135, %136 : vector<8x32xf32>
    %138 = vector.extract_strided_slice %125 {offsets = [0, 64], sizes = [8, 32], strides = [1, 1]} : vector<8x128xf32> to vector<8x32xf32>
    %139 = math.tanh %138 : vector<8x32xf32>
    %140 = vector.extract_strided_slice %125 {offsets = [0, 96], sizes = [8, 32], strides = [1, 1]} : vector<8x128xf32> to vector<8x32xf32>
    %141 = arith.negf %140 : vector<8x32xf32>
    %142 = math.exp %141 : vector<8x32xf32>
    %cst_30 = arith.constant 1.000000e+00 : f32
    %143 = vector.broadcast %cst_30 : f32 to vector<8x32xf32>
    %144 = arith.addf %143, %142 : vector<8x32xf32>
    %145 = arith.divf %143, %144 : vector<8x32xf32>
    %146 = arith.mulf %137, %120 : vector<8x32xf32>
    %147 = arith.mulf %131, %139 : vector<8x32xf32>
    %148 = arith.addf %146, %147 : vector<8x32xf32>
    %149 = math.tanh %148 : vector<8x32xf32>
    %150 = arith.mulf %145, %149 : vector<8x32xf32>
    %151 = vector.extract_strided_slice %7 {offsets = [40, 0], sizes = [8, 128], strides = [1, 1]} : vector<64x128xf32> to vector<8x128xf32>
    %cst_31 = arith.constant dense<0.000000e+00> : vector<8x128xf32>
    %152 = tpu.matmul %150, %8, %cst_31 {dimension_numbers = #tpu.dot_dimension_numbers<[1], [0], [0], [1], [0, 0, 1, 1], [], []>} : vector<8x32xf32>, vector<32x128xf32>, vector<8x128xf32> -> vector<8x128xf32>
    %153 = arith.addf %151, %152 : vector<8x128xf32>
    %154 = vector.extract_strided_slice %153 {offsets = [0, 0], sizes = [8, 32], strides = [1, 1]} : vector<8x128xf32> to vector<8x32xf32>
    %155 = arith.negf %154 : vector<8x32xf32>
    %156 = math.exp %155 : vector<8x32xf32>
    %cst_32 = arith.constant 1.000000e+00 : f32
    %157 = vector.broadcast %cst_32 : f32 to vector<8x32xf32>
    %158 = arith.addf %157, %156 : vector<8x32xf32>
    %159 = arith.divf %157, %158 : vector<8x32xf32>
    %160 = vector.extract_strided_slice %153 {offsets = [0, 32], sizes = [8, 32], strides = [1, 1]} : vector<8x128xf32> to vector<8x32xf32>
    %161 = arith.negf %160 : vector<8x32xf32>
    %162 = math.exp %161 : vector<8x32xf32>
    %cst_33 = arith.constant 1.000000e+00 : f32
    %163 = vector.broadcast %cst_33 : f32 to vector<8x32xf32>
    %164 = arith.addf %163, %162 : vector<8x32xf32>
    %165 = arith.divf %163, %164 : vector<8x32xf32>
    %166 = vector.extract_strided_slice %153 {offsets = [0, 64], sizes = [8, 32], strides = [1, 1]} : vector<8x128xf32> to vector<8x32xf32>
    %167 = math.tanh %166 : vector<8x32xf32>
    %168 = vector.extract_strided_slice %153 {offsets = [0, 96], sizes = [8, 32], strides = [1, 1]} : vector<8x128xf32> to vector<8x32xf32>
    %169 = arith.negf %168 : vector<8x32xf32>
    %170 = math.exp %169 : vector<8x32xf32>
    %cst_34 = arith.constant 1.000000e+00 : f32
    %171 = vector.broadcast %cst_34 : f32 to vector<8x32xf32>
    %172 = arith.addf %171, %170 : vector<8x32xf32>
    %173 = arith.divf %171, %172 : vector<8x32xf32>
    %174 = arith.mulf %165, %148 : vector<8x32xf32>
    %175 = arith.mulf %159, %167 : vector<8x32xf32>
    %176 = arith.addf %174, %175 : vector<8x32xf32>
    %177 = math.tanh %176 : vector<8x32xf32>
    %178 = arith.mulf %173, %177 : vector<8x32xf32>
    %179 = vector.extract_strided_slice %7 {offsets = [48, 0], sizes = [8, 128], strides = [1, 1]} : vector<64x128xf32> to vector<8x128xf32>
    %cst_35 = arith.constant dense<0.000000e+00> : vector<8x128xf32>
    %180 = tpu.matmul %178, %8, %cst_35 {dimension_numbers = #tpu.dot_dimension_numbers<[1], [0], [0], [1], [0, 0, 1, 1], [], []>} : vector<8x32xf32>, vector<32x128xf32>, vector<8x128xf32> -> vector<8x128xf32>
    %181 = arith.addf %179, %180 : vector<8x128xf32>
    %182 = vector.extract_strided_slice %181 {offsets = [0, 0], sizes = [8, 32], strides = [1, 1]} : vector<8x128xf32> to vector<8x32xf32>
    %183 = arith.negf %182 : vector<8x32xf32>
    %184 = math.exp %183 : vector<8x32xf32>
    %cst_36 = arith.constant 1.000000e+00 : f32
    %185 = vector.broadcast %cst_36 : f32 to vector<8x32xf32>
    %186 = arith.addf %185, %184 : vector<8x32xf32>
    %187 = arith.divf %185, %186 : vector<8x32xf32>
    %188 = vector.extract_strided_slice %181 {offsets = [0, 32], sizes = [8, 32], strides = [1, 1]} : vector<8x128xf32> to vector<8x32xf32>
    %189 = arith.negf %188 : vector<8x32xf32>
    %190 = math.exp %189 : vector<8x32xf32>
    %cst_37 = arith.constant 1.000000e+00 : f32
    %191 = vector.broadcast %cst_37 : f32 to vector<8x32xf32>
    %192 = arith.addf %191, %190 : vector<8x32xf32>
    %193 = arith.divf %191, %192 : vector<8x32xf32>
    %194 = vector.extract_strided_slice %181 {offsets = [0, 64], sizes = [8, 32], strides = [1, 1]} : vector<8x128xf32> to vector<8x32xf32>
    %195 = math.tanh %194 : vector<8x32xf32>
    %196 = vector.extract_strided_slice %181 {offsets = [0, 96], sizes = [8, 32], strides = [1, 1]} : vector<8x128xf32> to vector<8x32xf32>
    %197 = arith.negf %196 : vector<8x32xf32>
    %198 = math.exp %197 : vector<8x32xf32>
    %cst_38 = arith.constant 1.000000e+00 : f32
    %199 = vector.broadcast %cst_38 : f32 to vector<8x32xf32>
    %200 = arith.addf %199, %198 : vector<8x32xf32>
    %201 = arith.divf %199, %200 : vector<8x32xf32>
    %202 = arith.mulf %193, %176 : vector<8x32xf32>
    %203 = arith.mulf %187, %195 : vector<8x32xf32>
    %204 = arith.addf %202, %203 : vector<8x32xf32>
    %205 = math.tanh %204 : vector<8x32xf32>
    %206 = arith.mulf %201, %205 : vector<8x32xf32>
    %207 = vector.extract_strided_slice %7 {offsets = [56, 0], sizes = [8, 128], strides = [1, 1]} : vector<64x128xf32> to vector<8x128xf32>
    %cst_39 = arith.constant dense<0.000000e+00> : vector<8x128xf32>
    %208 = tpu.matmul %206, %8, %cst_39 {dimension_numbers = #tpu.dot_dimension_numbers<[1], [0], [0], [1], [0, 0, 1, 1], [], []>} : vector<8x32xf32>, vector<32x128xf32>, vector<8x128xf32> -> vector<8x128xf32>
    %209 = arith.addf %207, %208 : vector<8x128xf32>
    %210 = vector.extract_strided_slice %209 {offsets = [0, 0], sizes = [8, 32], strides = [1, 1]} : vector<8x128xf32> to vector<8x32xf32>
    %211 = arith.negf %210 : vector<8x32xf32>
    %212 = math.exp %211 : vector<8x32xf32>
    %cst_40 = arith.constant 1.000000e+00 : f32
    %213 = vector.broadcast %cst_40 : f32 to vector<8x32xf32>
    %214 = arith.addf %213, %212 : vector<8x32xf32>
    %215 = arith.divf %213, %214 : vector<8x32xf32>
    %216 = vector.extract_strided_slice %209 {offsets = [0, 32], sizes = [8, 32], strides = [1, 1]} : vector<8x128xf32> to vector<8x32xf32>
    %217 = arith.negf %216 : vector<8x32xf32>
    %218 = math.exp %217 : vector<8x32xf32>
    %cst_41 = arith.constant 1.000000e+00 : f32
    %219 = vector.broadcast %cst_41 : f32 to vector<8x32xf32>
    %220 = arith.addf %219, %218 : vector<8x32xf32>
    %221 = arith.divf %219, %220 : vector<8x32xf32>
    %222 = vector.extract_strided_slice %209 {offsets = [0, 64], sizes = [8, 32], strides = [1, 1]} : vector<8x128xf32> to vector<8x32xf32>
    %223 = math.tanh %222 : vector<8x32xf32>
    %224 = vector.extract_strided_slice %209 {offsets = [0, 96], sizes = [8, 32], strides = [1, 1]} : vector<8x128xf32> to vector<8x32xf32>
    %225 = arith.negf %224 : vector<8x32xf32>
    %226 = math.exp %225 : vector<8x32xf32>
    %cst_42 = arith.constant 1.000000e+00 : f32
    %227 = vector.broadcast %cst_42 : f32 to vector<8x32xf32>
    %228 = arith.addf %227, %226 : vector<8x32xf32>
    %229 = arith.divf %227, %228 : vector<8x32xf32>
    %230 = arith.mulf %221, %204 : vector<8x32xf32>
    %231 = arith.mulf %215, %223 : vector<8x32xf32>
    %232 = arith.addf %230, %231 : vector<8x32xf32>
    %233 = math.tanh %232 : vector<8x32xf32>
    %234 = arith.mulf %229, %233 : vector<8x32xf32>
    %c0_43 = arith.constant 0 : index
    %c0_44 = arith.constant 0 : index
    %235 = vector.load %arg5[%c0_43, %c0_44] : memref<32x128xf32, #tpu.memory_space<vmem>>, vector<32x128xf32>
    %cst_45 = arith.constant dense<0.000000e+00> : vector<8x128xf32>
    %236 = tpu.matmul %234, %235, %cst_45 {dimension_numbers = #tpu.dot_dimension_numbers<[1], [0], [0], [1], [0, 0, 1, 1], [], []>} : vector<8x32xf32>, vector<32x128xf32>, vector<8x128xf32> -> vector<8x128xf32>
    %c0_46 = arith.constant 0 : index
    %c0_47 = arith.constant 0 : index
    %237 = vector.load %arg7[%c0_46, %c0_47] : memref<1x128xf32, #tpu.memory_space<vmem>>, vector<1x128xf32>
    %238 = vector.broadcast %237 : vector<1x128xf32> to vector<8x128xf32>
    %239 = arith.addf %236, %238 : vector<8x128xf32>
    %c0_48 = arith.constant 0 : index
    %c0_49 = arith.constant 0 : index
    %240 = vector.load %arg6[%c0_48, %c0_49] : memref<32x128xf32, #tpu.memory_space<vmem>>, vector<32x128xf32>
    %cst_50 = arith.constant 0.000000e+00 : f32
    %241 = vector.broadcast %cst_50 : f32 to vector<2x32xf32>
    %cst_51 = arith.constant 0.000000e+00 : f32
    %242 = vector.broadcast %cst_51 : f32 to vector<2x32xf32>
    %243 = vector.extract_strided_slice %239 {offsets = [0, 0], sizes = [1, 128], strides = [1, 1]} : vector<8x128xf32> to vector<1x128xf32>
    %244 = vector.extract_strided_slice %239 {offsets = [4, 0], sizes = [1, 128], strides = [1, 1]} : vector<8x128xf32> to vector<1x128xf32>
    %245 = tpu.concatenate %243, %244 in 0 : vector<1x128xf32>, vector<1x128xf32> -> vector<2x128xf32>
    %cst_52 = arith.constant dense<0.000000e+00> : vector<2x128xf32>
    %246 = tpu.matmul %241, %240, %cst_52 {dimension_numbers = #tpu.dot_dimension_numbers<[1], [0], [0], [1], [0, 0, 1, 1], [], []>} : vector<2x32xf32>, vector<32x128xf32>, vector<2x128xf32> -> vector<2x128xf32>
    %247 = arith.addf %245, %246 : vector<2x128xf32>
    %248 = vector.extract_strided_slice %247 {offsets = [0, 0], sizes = [2, 32], strides = [1, 1]} : vector<2x128xf32> to vector<2x32xf32>
    %249 = arith.negf %248 : vector<2x32xf32>
    %250 = math.exp %249 : vector<2x32xf32>
    %cst_53 = arith.constant 1.000000e+00 : f32
    %251 = vector.broadcast %cst_53 : f32 to vector<2x32xf32>
    %252 = arith.addf %251, %250 : vector<2x32xf32>
    %253 = arith.divf %251, %252 : vector<2x32xf32>
    %254 = vector.extract_strided_slice %247 {offsets = [0, 32], sizes = [2, 32], strides = [1, 1]} : vector<2x128xf32> to vector<2x32xf32>
    %255 = arith.negf %254 : vector<2x32xf32>
    %256 = math.exp %255 : vector<2x32xf32>
    %cst_54 = arith.constant 1.000000e+00 : f32
    %257 = vector.broadcast %cst_54 : f32 to vector<2x32xf32>
    %258 = arith.addf %257, %256 : vector<2x32xf32>
    %259 = arith.divf %257, %258 : vector<2x32xf32>
    %260 = vector.extract_strided_slice %247 {offsets = [0, 64], sizes = [2, 32], strides = [1, 1]} : vector<2x128xf32> to vector<2x32xf32>
    %261 = math.tanh %260 : vector<2x32xf32>
    %262 = vector.extract_strided_slice %247 {offsets = [0, 96], sizes = [2, 32], strides = [1, 1]} : vector<2x128xf32> to vector<2x32xf32>
    %263 = arith.negf %262 : vector<2x32xf32>
    %264 = math.exp %263 : vector<2x32xf32>
    %cst_55 = arith.constant 1.000000e+00 : f32
    %265 = vector.broadcast %cst_55 : f32 to vector<2x32xf32>
    %266 = arith.addf %265, %264 : vector<2x32xf32>
    %267 = arith.divf %265, %266 : vector<2x32xf32>
    %268 = arith.mulf %259, %242 : vector<2x32xf32>
    %269 = arith.mulf %253, %261 : vector<2x32xf32>
    %270 = arith.addf %268, %269 : vector<2x32xf32>
    %271 = math.tanh %270 : vector<2x32xf32>
    %272 = arith.mulf %267, %271 : vector<2x32xf32>
    %273 = vector.extract_strided_slice %239 {offsets = [1, 0], sizes = [1, 128], strides = [1, 1]} : vector<8x128xf32> to vector<1x128xf32>
    %274 = vector.extract_strided_slice %239 {offsets = [5, 0], sizes = [1, 128], strides = [1, 1]} : vector<8x128xf32> to vector<1x128xf32>
    %275 = tpu.concatenate %273, %274 in 0 : vector<1x128xf32>, vector<1x128xf32> -> vector<2x128xf32>
    %cst_56 = arith.constant dense<0.000000e+00> : vector<2x128xf32>
    %276 = tpu.matmul %272, %240, %cst_56 {dimension_numbers = #tpu.dot_dimension_numbers<[1], [0], [0], [1], [0, 0, 1, 1], [], []>} : vector<2x32xf32>, vector<32x128xf32>, vector<2x128xf32> -> vector<2x128xf32>
    %277 = arith.addf %275, %276 : vector<2x128xf32>
    %278 = vector.extract_strided_slice %277 {offsets = [0, 0], sizes = [2, 32], strides = [1, 1]} : vector<2x128xf32> to vector<2x32xf32>
    %279 = arith.negf %278 : vector<2x32xf32>
    %280 = math.exp %279 : vector<2x32xf32>
    %cst_57 = arith.constant 1.000000e+00 : f32
    %281 = vector.broadcast %cst_57 : f32 to vector<2x32xf32>
    %282 = arith.addf %281, %280 : vector<2x32xf32>
    %283 = arith.divf %281, %282 : vector<2x32xf32>
    %284 = vector.extract_strided_slice %277 {offsets = [0, 32], sizes = [2, 32], strides = [1, 1]} : vector<2x128xf32> to vector<2x32xf32>
    %285 = arith.negf %284 : vector<2x32xf32>
    %286 = math.exp %285 : vector<2x32xf32>
    %cst_58 = arith.constant 1.000000e+00 : f32
    %287 = vector.broadcast %cst_58 : f32 to vector<2x32xf32>
    %288 = arith.addf %287, %286 : vector<2x32xf32>
    %289 = arith.divf %287, %288 : vector<2x32xf32>
    %290 = vector.extract_strided_slice %277 {offsets = [0, 64], sizes = [2, 32], strides = [1, 1]} : vector<2x128xf32> to vector<2x32xf32>
    %291 = math.tanh %290 : vector<2x32xf32>
    %292 = vector.extract_strided_slice %277 {offsets = [0, 96], sizes = [2, 32], strides = [1, 1]} : vector<2x128xf32> to vector<2x32xf32>
    %293 = arith.negf %292 : vector<2x32xf32>
    %294 = math.exp %293 : vector<2x32xf32>
    %cst_59 = arith.constant 1.000000e+00 : f32
    %295 = vector.broadcast %cst_59 : f32 to vector<2x32xf32>
    %296 = arith.addf %295, %294 : vector<2x32xf32>
    %297 = arith.divf %295, %296 : vector<2x32xf32>
    %298 = arith.mulf %289, %270 : vector<2x32xf32>
    %299 = arith.mulf %283, %291 : vector<2x32xf32>
    %300 = arith.addf %298, %299 : vector<2x32xf32>
    %301 = math.tanh %300 : vector<2x32xf32>
    %302 = arith.mulf %297, %301 : vector<2x32xf32>
    %303 = vector.extract_strided_slice %239 {offsets = [2, 0], sizes = [1, 128], strides = [1, 1]} : vector<8x128xf32> to vector<1x128xf32>
    %304 = vector.extract_strided_slice %239 {offsets = [6, 0], sizes = [1, 128], strides = [1, 1]} : vector<8x128xf32> to vector<1x128xf32>
    %305 = tpu.concatenate %303, %304 in 0 : vector<1x128xf32>, vector<1x128xf32> -> vector<2x128xf32>
    %cst_60 = arith.constant dense<0.000000e+00> : vector<2x128xf32>
    %306 = tpu.matmul %302, %240, %cst_60 {dimension_numbers = #tpu.dot_dimension_numbers<[1], [0], [0], [1], [0, 0, 1, 1], [], []>} : vector<2x32xf32>, vector<32x128xf32>, vector<2x128xf32> -> vector<2x128xf32>
    %307 = arith.addf %305, %306 : vector<2x128xf32>
    %308 = vector.extract_strided_slice %307 {offsets = [0, 0], sizes = [2, 32], strides = [1, 1]} : vector<2x128xf32> to vector<2x32xf32>
    %309 = arith.negf %308 : vector<2x32xf32>
    %310 = math.exp %309 : vector<2x32xf32>
    %cst_61 = arith.constant 1.000000e+00 : f32
    %311 = vector.broadcast %cst_61 : f32 to vector<2x32xf32>
    %312 = arith.addf %311, %310 : vector<2x32xf32>
    %313 = arith.divf %311, %312 : vector<2x32xf32>
    %314 = vector.extract_strided_slice %307 {offsets = [0, 32], sizes = [2, 32], strides = [1, 1]} : vector<2x128xf32> to vector<2x32xf32>
    %315 = arith.negf %314 : vector<2x32xf32>
    %316 = math.exp %315 : vector<2x32xf32>
    %cst_62 = arith.constant 1.000000e+00 : f32
    %317 = vector.broadcast %cst_62 : f32 to vector<2x32xf32>
    %318 = arith.addf %317, %316 : vector<2x32xf32>
    %319 = arith.divf %317, %318 : vector<2x32xf32>
    %320 = vector.extract_strided_slice %307 {offsets = [0, 64], sizes = [2, 32], strides = [1, 1]} : vector<2x128xf32> to vector<2x32xf32>
    %321 = math.tanh %320 : vector<2x32xf32>
    %322 = vector.extract_strided_slice %307 {offsets = [0, 96], sizes = [2, 32], strides = [1, 1]} : vector<2x128xf32> to vector<2x32xf32>
    %323 = arith.negf %322 : vector<2x32xf32>
    %324 = math.exp %323 : vector<2x32xf32>
    %cst_63 = arith.constant 1.000000e+00 : f32
    %325 = vector.broadcast %cst_63 : f32 to vector<2x32xf32>
    %326 = arith.addf %325, %324 : vector<2x32xf32>
    %327 = arith.divf %325, %326 : vector<2x32xf32>
    %328 = arith.mulf %319, %300 : vector<2x32xf32>
    %329 = arith.mulf %313, %321 : vector<2x32xf32>
    %330 = arith.addf %328, %329 : vector<2x32xf32>
    %331 = math.tanh %330 : vector<2x32xf32>
    %332 = arith.mulf %327, %331 : vector<2x32xf32>
    %333 = vector.extract_strided_slice %239 {offsets = [3, 0], sizes = [1, 128], strides = [1, 1]} : vector<8x128xf32> to vector<1x128xf32>
    %334 = vector.extract_strided_slice %239 {offsets = [7, 0], sizes = [1, 128], strides = [1, 1]} : vector<8x128xf32> to vector<1x128xf32>
    %335 = tpu.concatenate %333, %334 in 0 : vector<1x128xf32>, vector<1x128xf32> -> vector<2x128xf32>
    %cst_64 = arith.constant dense<0.000000e+00> : vector<2x128xf32>
    %336 = tpu.matmul %332, %240, %cst_64 {dimension_numbers = #tpu.dot_dimension_numbers<[1], [0], [0], [1], [0, 0, 1, 1], [], []>} : vector<2x32xf32>, vector<32x128xf32>, vector<2x128xf32> -> vector<2x128xf32>
    %337 = arith.addf %335, %336 : vector<2x128xf32>
    %338 = vector.extract_strided_slice %337 {offsets = [0, 0], sizes = [2, 32], strides = [1, 1]} : vector<2x128xf32> to vector<2x32xf32>
    %339 = arith.negf %338 : vector<2x32xf32>
    %340 = math.exp %339 : vector<2x32xf32>
    %cst_65 = arith.constant 1.000000e+00 : f32
    %341 = vector.broadcast %cst_65 : f32 to vector<2x32xf32>
    %342 = arith.addf %341, %340 : vector<2x32xf32>
    %343 = arith.divf %341, %342 : vector<2x32xf32>
    %344 = vector.extract_strided_slice %337 {offsets = [0, 32], sizes = [2, 32], strides = [1, 1]} : vector<2x128xf32> to vector<2x32xf32>
    %345 = arith.negf %344 : vector<2x32xf32>
    %346 = math.exp %345 : vector<2x32xf32>
    %cst_66 = arith.constant 1.000000e+00 : f32
    %347 = vector.broadcast %cst_66 : f32 to vector<2x32xf32>
    %348 = arith.addf %347, %346 : vector<2x32xf32>
    %349 = arith.divf %347, %348 : vector<2x32xf32>
    %350 = vector.extract_strided_slice %337 {offsets = [0, 64], sizes = [2, 32], strides = [1, 1]} : vector<2x128xf32> to vector<2x32xf32>
    %351 = math.tanh %350 : vector<2x32xf32>
    %352 = vector.extract_strided_slice %337 {offsets = [0, 96], sizes = [2, 32], strides = [1, 1]} : vector<2x128xf32> to vector<2x32xf32>
    %353 = arith.negf %352 : vector<2x32xf32>
    %354 = math.exp %353 : vector<2x32xf32>
    %cst_67 = arith.constant 1.000000e+00 : f32
    %355 = vector.broadcast %cst_67 : f32 to vector<2x32xf32>
    %356 = arith.addf %355, %354 : vector<2x32xf32>
    %357 = arith.divf %355, %356 : vector<2x32xf32>
    %358 = arith.mulf %349, %330 : vector<2x32xf32>
    %359 = arith.mulf %343, %351 : vector<2x32xf32>
    %360 = arith.addf %358, %359 : vector<2x32xf32>
    %361 = math.tanh %360 : vector<2x32xf32>
    %362 = arith.mulf %357, %361 : vector<2x32xf32>
    %363 = vector.extract_strided_slice %234 {offsets = [0, 0], sizes = [7, 32], strides = [1, 1]} : vector<8x32xf32> to vector<7x32xf32>
    %364 = vector.extract_strided_slice %234 {offsets = [1, 0], sizes = [7, 32], strides = [1, 1]} : vector<8x32xf32> to vector<7x32xf32>
    %365 = arith.mulf %363, %364 : vector<7x32xf32>
    %cst_68 = arith.constant dense<0.000000e+00> : vector<7xf32>
    %366 = vector.multi_reduction <add>, %365, %cst_68 [1] : vector<7x32xf32> to vector<7xf32>
    %367 = vector.shape_cast %366 : vector<7xf32> to vector<7x1xf32>
    %368 = arith.mulf %363, %363 : vector<7x32xf32>
    %cst_69 = arith.constant dense<0.000000e+00> : vector<7xf32>
    %369 = vector.multi_reduction <add>, %368, %cst_69 [1] : vector<7x32xf32> to vector<7xf32>
    %370 = vector.shape_cast %369 : vector<7xf32> to vector<7x1xf32>
    %371 = math.sqrt %370 : vector<7x1xf32>
    %372 = arith.mulf %364, %364 : vector<7x32xf32>
    %cst_70 = arith.constant dense<0.000000e+00> : vector<7xf32>
    %373 = vector.multi_reduction <add>, %372, %cst_70 [1] : vector<7x32xf32> to vector<7xf32>
    %374 = vector.shape_cast %373 : vector<7xf32> to vector<7x1xf32>
    %375 = math.sqrt %374 : vector<7x1xf32>
    %cst_71 = arith.constant 9.99999993E-9 : f32
    %376 = vector.broadcast %cst_71 : f32 to vector<7x1xf32>
    %377 = arith.maximumf %371, %376 : vector<7x1xf32>
    %cst_72 = arith.constant 9.99999993E-9 : f32
    %378 = vector.broadcast %cst_72 : f32 to vector<7x1xf32>
    %379 = arith.maximumf %375, %378 : vector<7x1xf32>
    %380 = arith.mulf %377, %379 : vector<7x1xf32>
    %381 = arith.divf %367, %380 : vector<7x1xf32>
    %382 = vector.extract_strided_slice %362 {offsets = [0, 0], sizes = [1, 32], strides = [1, 1]} : vector<2x32xf32> to vector<1x32xf32>
    %383 = vector.extract_strided_slice %362 {offsets = [1, 0], sizes = [1, 32], strides = [1, 1]} : vector<2x32xf32> to vector<1x32xf32>
    %384 = arith.mulf %382, %383 : vector<1x32xf32>
    %cst_73 = arith.constant dense<0.000000e+00> : vector<1xf32>
    %385 = vector.multi_reduction <add>, %384, %cst_73 [1] : vector<1x32xf32> to vector<1xf32>
    %386 = vector.shape_cast %385 : vector<1xf32> to vector<1x1xf32>
    %387 = arith.mulf %382, %382 : vector<1x32xf32>
    %cst_74 = arith.constant dense<0.000000e+00> : vector<1xf32>
    %388 = vector.multi_reduction <add>, %387, %cst_74 [1] : vector<1x32xf32> to vector<1xf32>
    %389 = vector.shape_cast %388 : vector<1xf32> to vector<1x1xf32>
    %390 = math.sqrt %389 : vector<1x1xf32>
    %391 = arith.mulf %383, %383 : vector<1x32xf32>
    %cst_75 = arith.constant dense<0.000000e+00> : vector<1xf32>
    %392 = vector.multi_reduction <add>, %391, %cst_75 [1] : vector<1x32xf32> to vector<1xf32>
    %393 = vector.shape_cast %392 : vector<1xf32> to vector<1x1xf32>
    %394 = math.sqrt %393 : vector<1x1xf32>
    %cst_76 = arith.constant 9.99999993E-9 : f32
    %395 = vector.broadcast %cst_76 : f32 to vector<1x1xf32>
    %396 = arith.maximumf %390, %395 : vector<1x1xf32>
    %cst_77 = arith.constant 9.99999993E-9 : f32
    %397 = vector.broadcast %cst_77 : f32 to vector<1x1xf32>
    %398 = arith.maximumf %394, %397 : vector<1x1xf32>
    %399 = arith.mulf %396, %398 : vector<1x1xf32>
    %400 = arith.divf %386, %399 : vector<1x1xf32>
    %cst_78 = arith.constant 0.000000e+00 : f32
    %401 = vector.broadcast %cst_78 : f32 to vector<50x2xf32>
    %c0_79 = arith.constant 0 : index
    %c0_80 = arith.constant 0 : index
    %402 = vector.load %arg17[%c0_79, %c0_80] : memref<50x2xf32, #tpu.memory_space<vmem>>, vector<50x2xf32>
    tpu.vector_store %arg17[%c0_79, %c0_80], %401 {strides = array<i32>} : memref<50x2xf32, #tpu.memory_space<vmem>>, vector<50x2xf32>,
    %c0_81 = arith.constant 0 : index
    %c0_82 = arith.constant 0 : index
    %403 = vector.load %arg17[%c0_81, %c0_82] : memref<50x2xf32, #tpu.memory_space<vmem>>, vector<7x1xf32>
    tpu.vector_store %arg17[%c0_81, %c0_82], %381 {strides = array<i32>} : memref<50x2xf32, #tpu.memory_space<vmem>>, vector<7x1xf32>,
    %c0_83 = arith.constant 0 : index
    %c1 = arith.constant 1 : index
    %404 = vector.load %arg17[%c0_83, %c1] : memref<50x2xf32, #tpu.memory_space<vmem>>, vector<1x1xf32>
    tpu.vector_store %arg17[%c0_83, %c1], %400 {strides = array<i32>} : memref<50x2xf32, #tpu.memory_space<vmem>>, vector<1x1xf32>,
    %c0_84 = arith.constant 0 : index
    %c0_85 = arith.constant 0 : index
    %405 = vector.load %arg17[%c0_84, %c0_85] : memref<50x2xf32, #tpu.memory_space<vmem>>, vector<50x2xf32>
    %c0_86 = arith.constant 0 : index
    %c0_87 = arith.constant 0 : index
    %406 = vector.load %arg8[%c0_86, %c0_87] : memref<32x50xf32, #tpu.memory_space<vmem>>, vector<32x50xf32>
    %cst_88 = arith.constant dense<0.000000e+00> : vector<32x2xf32>
    %407 = tpu.matmul %406, %405, %cst_88 {dimension_numbers = #tpu.dot_dimension_numbers<[1], [0], [0], [1], [0, 0, 1, 1], [], []>} : vector<32x50xf32>, vector<50x2xf32>, vector<32x2xf32> -> vector<32x2xf32>
    %c0_89 = arith.constant 0 : index
    %c0_90 = arith.constant 0 : index
    %408 = vector.load %arg9[%c0_89, %c0_90] : memref<32x1xf32, #tpu.memory_space<vmem>>, vector<32x1xf32>
    %409 = vector.broadcast %408 : vector<32x1xf32> to vector<32x2xf32>
    %410 = arith.addf %407, %409 : vector<32x2xf32>
    %cst_91 = arith.constant 0.000000e+00 : f32
    %411 = vector.broadcast %cst_91 : f32 to vector<32x2xf32>
    %412 = arith.maximumf %410, %411 : vector<32x2xf32>
    %c0_92 = arith.constant 0 : index
    %c0_93 = arith.constant 0 : index
    %413 = vector.load %arg12[%c0_92, %c0_93] : memref<32x1xf32, #tpu.memory_space<vmem>>, vector<32x1xf32>
    %414 = vector.broadcast %413 : vector<32x1xf32> to vector<32x2xf32>
    %415 = arith.subf %412, %414 : vector<32x2xf32>
    %c0_94 = arith.constant 0 : index
    %c0_95 = arith.constant 0 : index
    %416 = vector.load %arg13[%c0_94, %c0_95] : memref<32x1xf32, #tpu.memory_space<vmem>>, vector<32x1xf32>
    %cst_96 = arith.constant 9.99999974E-6 : f32
    %417 = vector.broadcast %cst_96 : f32 to vector<32x1xf32>
    %418 = arith.addf %416, %417 : vector<32x1xf32>
    %419 = math.sqrt %418 : vector<32x1xf32>
    %420 = vector.broadcast %419 : vector<32x1xf32> to vector<32x2xf32>
    %421 = arith.divf %415, %420 : vector<32x2xf32>
    %c0_97 = arith.constant 0 : index
    %c0_98 = arith.constant 0 : index
    %422 = vector.load %arg10[%c0_97, %c0_98] : memref<32x1xf32, #tpu.memory_space<vmem>>, vector<32x1xf32>
    %423 = vector.broadcast %422 : vector<32x1xf32> to vector<32x2xf32>
    %424 = arith.mulf %421, %423 : vector<32x2xf32>
    %c0_99 = arith.constant 0 : index
    %c0_100 = arith.constant 0 : index
    %425 = vector.load %arg11[%c0_99, %c0_100] : memref<32x1xf32, #tpu.memory_space<vmem>>, vector<32x1xf32>
    %426 = vector.broadcast %425 : vector<32x1xf32> to vector<32x2xf32>
    %427 = arith.addf %424, %426 : vector<32x2xf32>
    %c0_101 = arith.constant 0 : index
    %c0_102 = arith.constant 0 : index
    %428 = vector.load %arg14[%c0_101, %c0_102] : memref<1x32xf32, #tpu.memory_space<vmem>>, vector<1x32xf32>
    %cst_103 = arith.constant dense<0.000000e+00> : vector<1x2xf32>
    %429 = tpu.matmul %428, %427, %cst_103 {dimension_numbers = #tpu.dot_dimension_numbers<[1], [0], [0], [1], [0, 0, 1, 1], [], []>} : vector<1x32xf32>, vector<32x2xf32>, vector<1x2xf32> -> vector<1x2xf32>
    %c0_104 = arith.constant 0 : index
    %c0_105 = arith.constant 0 : index
    %430 = vector.load %arg15[%c0_104, %c0_105] : memref<1x1xf32, #tpu.memory_space<vmem>>, vector<1x1xf32>
    %431 = vector.broadcast %430 : vector<1x1xf32> to vector<1x2xf32>
    %432 = arith.addf %429, %431 : vector<1x2xf32>
    %cst_106 = arith.constant 0.000000e+00 : f32
    %433 = vector.broadcast %cst_106 : f32 to vector<1x128xf32>
    %c0_107 = arith.constant 0 : index
    %c0_108 = arith.constant 0 : index
    %434 = vector.load %arg18[%c0_107, %c0_108] : memref<1x128xf32, #tpu.memory_space<vmem>>, vector<1x128xf32>
    tpu.vector_store %arg18[%c0_107, %c0_108], %433 {strides = array<i32>} : memref<1x128xf32, #tpu.memory_space<vmem>>, vector<1x128xf32>,
    %c0_109 = arith.constant 0 : index
    %c0_110 = arith.constant 0 : index
    %435 = vector.load %arg18[%c0_109, %c0_110] : memref<1x128xf32, #tpu.memory_space<vmem>>, vector<1x2xf32>
    tpu.vector_store %arg18[%c0_109, %c0_110], %432 {strides = array<i32>} : memref<1x128xf32, #tpu.memory_space<vmem>>, vector<1x2xf32>,
    %c0_111 = arith.constant 0 : index
    %c0_112 = arith.constant 0 : index
    %436 = vector.load %arg18[%c0_111, %c0_112] : memref<1x128xf32, #tpu.memory_space<vmem>>, vector<1x128xf32>
    %c0_113 = arith.constant 0 : index
    %c0_114 = arith.constant 0 : index
    %c0_115 = arith.constant 0 : index
    %437 = vector.load %arg16[%c0_113, %c0_114, %c0_115] : memref<1x1x128xf32, #tpu.memory_space<vmem>>, vector<1x1x128xf32>
    %438 = vector.shape_cast %437 : vector<1x1x128xf32> to vector<1x128xf32>
    %439 = vector.shape_cast %436 : vector<1x128xf32> to vector<1x1x128xf32>
    tpu.vector_store %arg16[%c0_113, %c0_114, %c0_115], %439 {strides = array<i32>} : memref<1x1x128xf32, #tpu.memory_space<vmem>>, vector<1x1x128xf32>,
    return
  }
  func.func @transform_0(%arg0: i32) -> (i32, i32, i32, i32) {
    %c0_i32 = arith.constant 0 : i32
    %c0_i32_0 = arith.constant 0 : i32
    %c0_i32_1 = arith.constant 0 : i32
    %c0_i32_2 = arith.constant 0 : i32
    return %arg0, %c0_i32, %c0_i32_0, %c0_i32_1 : i32, i32, i32, i32
  }
  func.func @transform_1(%arg0: i32) -> (i32, i32) {
    %c0_i32 = arith.constant 0 : i32
    %c0_i32_0 = arith.constant 0 : i32
    %c0_i32_1 = arith.constant 0 : i32
    return %c0_i32, %c0_i32_0 : i32, i32
  }
  func.func @transform_2(%arg0: i32) -> (i32, i32) {
    %c0_i32 = arith.constant 0 : i32
    %c0_i32_0 = arith.constant 0 : i32
    %c0_i32_1 = arith.constant 0 : i32
    return %c0_i32, %c0_i32_0 : i32, i32
  }
  func.func @transform_3(%arg0: i32) -> (i32, i32) {
    %c0_i32 = arith.constant 0 : i32
    %c0_i32_0 = arith.constant 0 : i32
    %c0_i32_1 = arith.constant 0 : i32
    return %c0_i32, %c0_i32_0 : i32, i32
  }
  func.func @transform_4(%arg0: i32) -> (i32, i32) {
    %c0_i32 = arith.constant 0 : i32
    %c0_i32_0 = arith.constant 0 : i32
    %c0_i32_1 = arith.constant 0 : i32
    return %c0_i32, %c0_i32_0 : i32, i32
  }
  func.func @transform_5(%arg0: i32) -> (i32, i32) {
    %c0_i32 = arith.constant 0 : i32
    %c0_i32_0 = arith.constant 0 : i32
    %c0_i32_1 = arith.constant 0 : i32
    return %c0_i32, %c0_i32_0 : i32, i32
  }
  func.func @transform_6(%arg0: i32) -> (i32, i32) {
    %c0_i32 = arith.constant 0 : i32
    %c0_i32_0 = arith.constant 0 : i32
    %c0_i32_1 = arith.constant 0 : i32
    return %c0_i32, %c0_i32_0 : i32, i32
  }
  func.func @transform_7(%arg0: i32) -> (i32, i32) {
    %c0_i32 = arith.constant 0 : i32
    %c0_i32_0 = arith.constant 0 : i32
    %c0_i32_1 = arith.constant 0 : i32
    return %c0_i32, %c0_i32_0 : i32, i32
  }
  func.func @transform_8(%arg0: i32) -> (i32, i32) {
    %c0_i32 = arith.constant 0 : i32
    %c0_i32_0 = arith.constant 0 : i32
    %c0_i32_1 = arith.constant 0 : i32
    return %c0_i32, %c0_i32_0 : i32, i32
  }
  func.func @transform_9(%arg0: i32) -> (i32, i32) {
    %c0_i32 = arith.constant 0 : i32
    %c0_i32_0 = arith.constant 0 : i32
    %c0_i32_1 = arith.constant 0 : i32
    return %c0_i32, %c0_i32_0 : i32, i32
  }
  func.func @transform_10(%arg0: i32) -> (i32, i32) {
    %c0_i32 = arith.constant 0 : i32
    %c0_i32_0 = arith.constant 0 : i32
    %c0_i32_1 = arith.constant 0 : i32
    return %c0_i32, %c0_i32_0 : i32, i32
  }
  func.func @transform_11(%arg0: i32) -> (i32, i32) {
    %c0_i32 = arith.constant 0 : i32
    %c0_i32_0 = arith.constant 0 : i32
    %c0_i32_1 = arith.constant 0 : i32
    return %c0_i32, %c0_i32_0 : i32, i32
  }
  func.func @transform_12(%arg0: i32) -> (i32, i32) {
    %c0_i32 = arith.constant 0 : i32
    %c0_i32_0 = arith.constant 0 : i32
    %c0_i32_1 = arith.constant 0 : i32
    return %c0_i32, %c0_i32_0 : i32, i32
  }
  func.func @transform_13(%arg0: i32) -> (i32, i32) {
    %c0_i32 = arith.constant 0 : i32
    %c0_i32_0 = arith.constant 0 : i32
    %c0_i32_1 = arith.constant 0 : i32
    return %c0_i32, %c0_i32_0 : i32, i32
  }
  func.func @transform_14(%arg0: i32) -> (i32, i32) {
    %c0_i32 = arith.constant 0 : i32
    %c0_i32_0 = arith.constant 0 : i32
    %c0_i32_1 = arith.constant 0 : i32
    return %c0_i32, %c0_i32_0 : i32, i32
  }
  func.func @transform_15(%arg0: i32) -> (i32, i32, i32) {
    %c0_i32 = arith.constant 0 : i32
    %c0_i32_0 = arith.constant 0 : i32
    %c0_i32_1 = arith.constant 0 : i32
    return %arg0, %c0_i32, %c0_i32_0 : i32, i32, i32
  }
}

</mosaic_0001>

<bundles_post_ra>
// kernel: tpu_custom_call.1
= control target key start
LH: loop header
LB: loop body
LE: loop exit
PB: predicated region body
PF: predicated region fallthrough
CT: control target
= control target key end

     0   :  { %s3949_s0 = inlined_call_operand.vmem [shape: f32[2,8,8,16], index: 0, kind: input, shape index: {}]   ;;  %s3950_s1 = inlined_call_operand.hbm [shape: f32[16,128], index: 1, kind: input, shape index: {}]   ;;  %s3951_s2 = inlined_call_operand.vmem [shape: f32[32,128], index: 2, kind: input, shape index: {}]   ;;  %s3952_s3 = inlined_call_operand.vmem [shape: f32[1,128], index: 3, kind: input, shape index: {}]   ;;  %s3953_s4 = inlined_call_operand.hbm [shape: f32[32,128], index: 4, kind: input, shape index: {}]   ;;  %s3954_s5 = inlined_call_operand.hbm [shape: f32[32,128], index: 5, kind: input, shape index: {}]   ;;  %s3955_s6 = inlined_call_operand.vmem [shape: f32[1,128], index: 6, kind: input, shape index: {}]   ;;  %s3956_s7 = inlined_call_operand.hbm [shape: f32[32,50], index: 7, kind: input, shape index: {}]   ;;  %s3957_s8 = inlined_call_operand.vmem [shape: f32[32,1], index: 8, kind: input, shape index: {}]   ;;  %s3958_s9 = inlined_call_operand.vmem [shape: f32[32,1], index: 9, kind: input, shape index: {}]   ;;  %s3959_s10 = inlined_call_operand.vmem [shape: f32[32,1], index: 10, kind: input, shape index: {}]   ;;  %s3960_s11 = inlined_call_operand.vmem [shape: f32[32,1], index: 11, kind: input, shape index: {}]   ;;  %s3961_s12 = inlined_call_operand.vmem [shape: f32[32,1], index: 12, kind: input, shape index: {}]   ;;  %s3962_s13 = inlined_call_operand.vmem [shape: f32[1,32], index: 13, kind: input, shape index: {}]   ;;  %s3963_s14 = inlined_call_operand.<no memory space> [shape: f32[1,1], index: 14, kind: input, shape index: {}]   ;;  %s3964_s15 = inlined_call_operand.hbm [shape: f32[2,1,128], index: 15, kind: output, shape index: {}]  }
   0x1   :  { %v20_v0 = vstv %s3963_s14 }
   0x2   :  { %21 = vst [vmem:[#allocation4] sm:$0x1] %v20_v0 }
   0x3   :  { %22 = vsyncpa [#allocation6], 0 }
   0x4   :  { %23 = vsyncpa [#allocation9], 0 }
   0x5   :  { %24 = vsyncpa [#allocation12], 0 }
   0x6   :  { %25 = vsyncpa [#allocation7], 0 }
   0x7   :  { %27 = vsyncpa [#allocation7 + $0x1], 0  ;;  %s3427_s20 = smov 0   ;;  %s3429_s21 = smov 0  }
   0x8   :  { %s3431_s22 = smov 0   ;;  %s3433_s23 = smov 0  }
   0x9 LB: > { %3970 = sst [smem:[#allocation18_spill]] %s3317_s20  ;;  %s3448_s14 = sadd.s32 4294967295, %s3329_s23   ;;  %s3329_s23 = sphi %s3433_s23, %s3981_s23   ;;  %s3325_s22 = sphi %s3431_s22, %s3983_s22   ;;  %s3321_s21 = sphi %s3429_s21, %s3985_s21   ;;  %s3317_s20 = sphi %s3427_s20, %s3984_s20  }
   0xa   : > { %3971 = sst [smem:[#allocation19_spill]] %s3325_s22  ;;  %s2601_s24 = sadd.s32 4294967294, %s3329_s23  }
   0xb   : > { %s3452_s25 = sadd.s32 1, %s3329_s23   ;;  %s360_s26 = sadd.s32 1, %s3325_s22 }
   0xc   : > { %3972 = sst [smem:[#allocation20_spill]] %s3452_s25  ;;  %s357_s27 = ssub.s32 %s3329_s23, %s3452_s25 }
   0xd   : > { %p370_p0 = scmp.ne.s32.totalorder %s3325_s22, %s3321_s21  ;;  %p358_p1 = scmp.eq.s32.totalorder %s357_s27, 0 }
   0xe   : > { %p371_p2 = scmp.eq.s32.totalorder %s3448_s14, 1  ;;  %p376_p3 = scmp.ne.s32.totalorder %s3321_s21, %s3317_s20 }
   0xf   : > { %p377_p4 = scmp.eq.s32.totalorder %s2601_s24, 1  ;;  %p2602_p7 = scmp.ge.s32.totalorder %s3329_s23, 1 }
  0x10   : > { %s3463_s28 = scalar_select %p358_p1, %s3325_s22, %s360_s26  }
  0x11   : > { %p3465_p5 = por %p371_p2, %p370_p0  ;;  %p3469_p6 = por %p377_p4, %p376_p3 }
  0x12   : > { %3973 = sst [smem:[#allocation21_spill]] %s3463_s28  ;;  %p384_p8 = scmp.lt.s32.totalorder %s3329_s23, 3 }
  0x13   : > { %s3975_s30 = scalar_select %p3469_p6, 1, 0 }
  0x14   : > { %p2974_p9 = scmp.eq.s32.totalorder %s3448_s14, 0  ;;  %p3476_p10 = pnand %p2602_p7, %p384_p8 }
  0x15   : > { %3976 = sst [smem:[#allocation22_spill]] %s3975_s30  ;;  %s3331_s17 = smov [#allocation8]  }
  0x16   : > { %p2957_p11 = pneg %p3476_p10  ;;  %s415_s18 = sshll.u32 %s3331_s17, 4  ;;  %s416_s18 = int_to_ptr.vmem [resolvable:$true] %s415_s18 }
  0x17   : > { %s3332_s24 = smov [#allocation5]   ;;  %s3333_s27 = smov [#allocation10]  }
  0x18   : > { %p3484_p12 = pnand %p2974_p9, %p2957_p11  ;;  %s396_s26 = sshll.u32 %s3332_s24, 4  ;;  %s397_s26 = int_to_ptr.vmem [resolvable:$true] %s396_s26 }
  0x19   : > { %s428_s28 = sshll.u32 %s3333_s27, 4  ;;  %s3164_s22 = scalar_lea.vmem %s416_s18, 512  ;;  %s429_s28 = int_to_ptr.vmem [resolvable:$true] %s428_s28 }
  0x1a   : > { %p3155_p13 = pneg %p3484_p12  ;;  %p3165_p0 = scmp.ne.s32.totalorder %s416_s18, %s3164_s22 }
  0x1b   : > { %p3172_p3 = scmp.lt.s32.totalorder %s416_s18, %s416_s18  ;;  %p3173_p4 = scmp.lt.s32.totalorder %s3164_s22, %s3164_s22 }
  0x1c   : > { %p3167_p1 = pnand %p3165_p0, %p3155_p13 }
  0x1d   : > { %p3174_p7 = por %p3173_p4, %p3172_p3 }
  0x1e   : > { %p3168_p2 = pneg %p3167_p1 }
  0x20   : > { %p3175_p8 = pnand %p3174_p7, %p3168_p2 }
  0x22   : > { %3178 = shalt.err (!%p3175_p8)
}
  0x23   : > { %s3334_s17 = smov 128   ;;  %s3335_s24 = smov 8  }
  0x24   : > { %2963 = dma.hbm_to_vmem [thread:$0]  (!%p3484_p12), %s3953_s4, 512, %s416_s18, [#allocation9], %s3334_s17, %s3334_s17, %s3335_s24  }
  0x25   : > { %s3190_s30 = scalar_lea.vmem %s397_s26, 256  ;;  %p3198_p2 = scmp.lt.s32.totalorder %s397_s26, %s397_s26 }
  0x26   : > { %p3191_p11 = scmp.ne.s32.totalorder %s397_s26, %s3190_s30  ;;  %p3199_p3 = scmp.lt.s32.totalorder %s3190_s30, %s3190_s30 }
  0x28   : > { %p3193_p0 = pnand %p3191_p11, %p3155_p13  ;;  %p3200_p4 = por %p3199_p3, %p3198_p2 }
  0x2a   : > { %p3194_p1 = pneg %p3193_p0 }
  0x2c   : > { %p3201_p7 = pnand %p3200_p4, %p3194_p1 }
  0x2e   : > { %3204 = shalt.err (!%p3201_p7)
}
  0x2f   : > { %2960 = dma.hbm_to_vmem [thread:$0]  (!%p3484_p12), %s3950_s1, 256, %s397_s26, [#allocation6], %s3334_s17, %s3334_s17, %s3335_s24  }
  0x30   : > { %s3216_s25 = scalar_lea.vmem %s429_s28, 512  ;;  %p3224_p2 = scmp.lt.s32.totalorder %s429_s28, %s429_s28 }
  0x31   : > { %p3217_p8 = scmp.ne.s32.totalorder %s429_s28, %s3216_s25  ;;  %p3225_p1 = scmp.lt.s32.totalorder %s3216_s25, %s3216_s25 }
  0x33   : > { %p3219_p11 = pnand %p3217_p8, %p3155_p13  ;;  %p3226_p3 = por %p3225_p1, %p3224_p2 }
  0x35   : > { %p3220_p0 = pneg %p3219_p11 }
  0x37   : > { %p3227_p4 = pnand %p3226_p3, %p3220_p0 }
  0x39   : > { %3230 = shalt.err (!%p3227_p4)
}
  0x3a   : > { %2966 = dma.hbm_to_vmem [thread:$0]  (!%p3484_p12), %s3954_s5, 512, %s429_s28, [#allocation9], %s3334_s17, %s3334_s17, %s3335_s24  }
  0x3b   : > { %s3336_s18 = smov [#allocation11]  }
  0x3c   : > { %s444_s26 = sshll.u32 %s3336_s18, 4  ;;  %s445_s26 = int_to_ptr.vmem [resolvable:$true] %s444_s26 }
  0x3d   : > { %s3242_s27 = scalar_lea.vmem %s445_s26, 512  ;;  %p3250_p0 = scmp.lt.s32.totalorder %s445_s26, %s445_s26 }
  0x3e   : > { %p3243_p7 = scmp.ne.s32.totalorder %s445_s26, %s3242_s27  ;;  %p3251_p2 = scmp.lt.s32.totalorder %s3242_s27, %s3242_s27 }
  0x40   : > { %p3245_p8 = pnand %p3243_p7, %p3155_p13  ;;  %p3252_p1 = por %p3251_p2, %p3250_p0 }
  0x42   : > { %p3246_p11 = pneg %p3245_p8 }
  0x44   : > { %p3253_p3 = pnand %p3252_p1, %p3246_p11 }
  0x46   : > { %3256 = shalt.err (!%p3253_p3)
}
  0x47   : > { %2969 = dma.hbm_to_vmem [thread:$0]  (!%p3484_p12), %s3956_s7, 512, %s445_s26, [#allocation12], %s3334_s17, %s3334_s17, %s3335_s24  }
  0x48   : > { %489 = sbr.rel (%p3476_p10) target bundleno = 9106 (0x2392), region = 80 }
  0x4d   : > { %3300 = dma.done.wait (%p2974_p9), [#allocation6], 256  }
  0x4e   : > { %3302 = vsyncadd (%p2974_p9), [#allocation6], 4294967040 }
  0x4f   : > { %3304 = dma.done.wait (%p2974_p9), [#allocation9], 1024  }
  0x50   : > { %3306 = vsyncadd (%p2974_p9), [#allocation9], 4294966272 }
  0x51   : > { %3308 = dma.done.wait (%p2974_p9), [#allocation12], 512  }
  0x52   : > { %3310 = vsyncadd (%p2974_p9), [#allocation12], 4294966784  ;;  %p548_p10 = scmp.lt.s32.totalorder %s3448_s14, 1  ;;  %v3337_v1 = vmov 0.0   ;;  %vm3338_vm0 = vmmov 0   ;;  %v562_v2 = vld [vmem:[#allocation5 + $0x8] sm:$0xff] }
  0x53   : > { %2765 = vmatprep.subr.mxu1 %v3337_v1  ;;  %2487 = vst [vmem:[#allocation3] sm:$0x1] %v3337_v1  ;;  %2773 = vmatprep.mubr.msk.f32.mxu1 %vm3338_vm0, %v3337_v1  ;;  %v3562_v3 = vld [vmem:[%s3951_s2 + $0x18] sm:$0xff]  ;;  %v3568_v5 = vld [vmem:[%s3951_s2 + $0x10] sm:$0xff]  ;;  %vm570_vm1 = vcmask 130048   ;;  %v3577_v8 = vld [vmem:[%s3951_s2 + $0x8] sm:$0xff] }
  0x54   : > { %s549_s16 = scalar_select %p548_p10, %s3448_s14, 1  ;;  %v561_v4 = vld [vmem:[#allocation5] sm:$0xff]  ;;  %2749 = vmatprep.subr.mxu0 %v562_v2  ;;  %2766 = vmatpush3.msra.mxu1 %v3562_v3  ;;  %vm704_vm2 = vcmask 261120   ;;  %vm1596_vm3 = vcmask 1040384   ;;  %vm2059_vm4 = vcmask 253952   ;;  %vm2078_vm5 = vcmask 254977  }
  0x55   : > { %2750 = vmatpush3.msra.mxu0 %v562_v2  ;;  %2767 = vmatprep.subr.mxu1 %v3337_v1  ;;  %v3585_v9 = vld [vmem:[%s3951_s2] sm:$0xff]  ;;  %s3339_s24 = smov 64   ;;  %s3340_s20 = smov 32   ;;  %vm2032_vm6 = vcmask 261121   ;;  %vm2013_vm7 = vcmask 260096   ;;  %vm2104_vm9 = vcmask 9216  }
  0x56   : > { %s2657_s19 = sshll.u32 %s549_s16, 6  ;;  %2751 = vmatprep.subr.mxu0 %v561_v4  ;;  %2768 = vmatpush3.msra.mxu1 %v3568_v5  ;;  %v3614_v11 = vld [vmem:[%s3952_s3] ss:$0 sm:$0xff]  ;;  %vm2097_vm10 = vcmask 15360   ;;  %2105 = vst.msk [vmem:[#allocation2 + $0x30] sm:$0x3] %vm2104_vm9, %v3337_v1 }
  0x57   : > { %s3557_s25 = scalar_lea.vmem %s3949_s0, %s2657_s19  ;;  %2752 = vmatpush3.msra.mxu0 %v561_v4  ;;  %2769 = vmatprep.subr.mxu1 %v3337_v1  ;;  %2103 = vst.msk [vmem:[#allocation2 + $0x28] sm:$0xff] %vm2097_vm10, %v3337_v1  ;;  %2098 = vst.msk [vmem:[#allocation2] sm:$0xff] %vm2097_vm10, %v3337_v1  ;;  %vm2162_vm14 = vcmask 1041408   ;;  %vm2149_vm15 = vcmask 408576   ;;  %s546_s17 = sand.u32 1, %s3321_s21  }
  0x58   : > { %v553_v6 = vld [vmem:[%s3557_s25] sm:$0xff]  ;;  %v554_v7 = vld [vmem:[%s3557_s25 + $0x8] sm:$0xff]  ;;  %2770 = vmatpush3.msra.mxu1 %v3577_v8  ;;  %2787 = vmatprep.subr.mxu0 %v3337_v1  ;;  %v555_v45 = vld [vmem:[%s3557_s25 + $0x10] sm:$0xff]  ;;  %2099 = vst.msk [vmem:[#allocation2 + $0x8] sm:$0xff] %vm2097_vm10, %v3337_v1  ;;  %s2493_s27 = scalar_lea.sflag [#allocation7], %s546_s17  ;;  %s3343_s22 = smov [#allocation13]  }
  0x59   : > { %2753 = vmatprep.mubr.msk.f32.mxu0 %vm570_vm1, %v553_v6  ;;  %2771 = vmatprep.subr.mxu1 %v3337_v1  ;;  %v556_v46 = vld [vmem:[%s3557_s25 + $0x18] sm:$0xff]  ;;  %v557_v47 = vld [vmem:[%s3557_s25 + $0x20] sm:$0xff]  ;;  %v558_v48 = vld [vmem:[%s3557_s25 + $0x28] sm:$0xff]  ;;  %2100 = vst.msk [vmem:[#allocation2 + $0x10] sm:$0xff] %vm2097_vm10, %v3337_v1  ;;  %s3261_s16 = sshll.u32 %s3343_s22, 4  ;;  %s3262_s16 = int_to_ptr.vmem [resolvable:$false] %s3261_s16 }
  0x5a   : > { %2754 = vmatmul.mubr.msk.f32.vlgmr.msra.gmra.mxu0 %vm570_vm1, %v554_v7  ;;  %2772 = vmatpush3.msra.mxu1 %v3585_v9  ;;  %v559_v49 = vld [vmem:[%s3557_s25 + $0x30] sm:$0xff]  ;;  %v560_v50 = vld [vmem:[%s3557_s25 + $0x38] sm:$0xff]  ;;  %2101 = vst.msk [vmem:[#allocation2 + $0x18] sm:$0xff] %vm2097_vm10, %v3337_v1  ;;  %2102 = vst.msk [vmem:[#allocation2 + $0x20] sm:$0xff] %vm2097_vm10, %v3337_v1 }
  0x5b   : > { %2788 = vmatpush3.msra.mxu0 %v3562_v3  ;;  %2774 = vmatmul.mubr.f32.vlgmr.msra.gmra.mxu1 %v3337_v1 }
  0x5c   : > { %2789 = vmatprep.subr.mxu0 %v3337_v1  ;;  %2776 = vmatprep.subr.mxu1 %v3337_v1 }
  0x5d   : > { %2777 = vmatpush3.msra.mxu1 %v3562_v3  ;;  %2784 = vmatprep.mubr.msk.f32.mxu1 %vm3338_vm0, %v3337_v1 }
  0x5e   : > { %2778 = vmatprep.subr.mxu1 %v3337_v1  ;;  %2790 = vmatpush3.msra.mxu0 %v3568_v5 }
  0x5f   : > { %2779 = vmatpush3.msra.mxu1 %v3568_v5  ;;  %2791 = vmatprep.subr.mxu0 %v3337_v1 }
  0x60   : > { %2780 = vmatprep.subr.mxu1 %v3337_v1  ;;  %2792 = vmatpush3.msra.mxu0 %v3577_v8 }
  0x61   : > { %2781 = vmatpush3.msra.mxu1 %v3577_v8  ;;  %2793 = vmatprep.subr.mxu0 %v3337_v1 }
  0x62   : > { %2782 = vmatprep.subr.mxu1 %v3337_v1  ;;  %2794 = vmatpush3.msra.mxu0 %v3585_v9 }
  0x63   : > { %2783 = vmatpush3.msra.mxu1 %v3585_v9  ;;  %2809 = vmatprep.subr.mxu0 %v3337_v1 }
  0x64   : > { %2798 = vmatprep.subr.mxu1 %v3337_v1  ;;  %2756 = vmatprep.mubr.msk.f32.mxu0 %vm570_vm1, %v555_v45 }
  0x65   : > { %2757 = vmatmul.mubr.msk.f32.gmra.mxu0 %vm570_vm1, %v556_v46 }
  0x66   : > { %2759 = vmatprep.mubr.msk.f32.mxu0 %vm570_vm1, %v557_v47 }
  0x69   : > { %2760 = vmatmul.mubr.msk.f32.gmra.mxu0 %vm570_vm1, %v558_v48 }
  0x6a   : > { %2762 = vmatprep.mubr.msk.f32.mxu0 %vm570_vm1, %v559_v49 }
  0x6d   : > { %2763 = vmatmul.mubr.msk.f32.gmra.mxu0 %vm570_vm1, %v560_v50 }
  0x6e   : > { %2795 = vmatprep.mubr.msk.f32.mxu0 %vm3338_vm0, %v3337_v1 }
 0x11a   : > { %v2755_v10 = vpop.f32.mrf.mxu0 }
 0x11b   : > { %v774_v14 = vpop.f32.mrf.mxu1  ;;  %v667_v31 = vadd.f32 %v2755_v10, %v3614_v11 }
 0x11c   : > { %v661_v12 = vpop.f32.mrf.mxu0 }
 0x11d   : > { %v662_v13 = vadd.f32 %v3614_v11, %v661_v12  ;;  %v2775_v16 = vpop.f32.mrf.mxu1 }
 0x11f   : > { %v778_v15 = vadd.f32 %v774_v14, %v662_v13 }
 0x121   : > { %3029 = vtanh.f32 %v778_v15  ;;  %v2624_v18 = vmul.f32 -1.442695, %v778_v15 }
 0x123   : > { %3031 = vpow2.f32 %v2624_v18 }
 0x125   : > { %v2758_v55 = vpop.f32.mrf.mxu0 }
 0x127   : > { %v671_v56 = vpop.f32.mrf.mxu0 }
 0x128   : > { %v672_v61 = vadd.f32 %v3614_v11, %v671_v56 }
 0x129   : > { %v3662_v57 = vpop.f32.mrf.mxu0 }
 0x12b   : > { %v3664_v58 = vpop.f32.mrf.mxu0 }
 0x12d   : > { %v3666_v59 = vpop.f32.mrf.mxu0 }
 0x12e   : > { %v3030_v17 = vpop.eup %3029 }
 0x12f   : > { %788 = vrot.lane.b32.xlu0 %v3030_v17, %s3339_s24  ;;  %v3668_v60 = vpop.f32.mrf.mxu0 }
 0x130   : > { %v3032_v19 = vpop.eup %3031 }
 0x131   : > { %v782_v20 = vadd.f32 1.0, %v3032_v19 }
 0x133   : > { %3033 = vrcp.f32 %v782_v20 }
 0x140   : > { %v3034_v21 = vpop.eup %3033 }
 0x141   : > { %v786_v24 = vmul.f32 0.0, %v3034_v21 }
 0x1a1   : > { %v789_v22 = vpop.permute.xlu0 %788 }
 0x1a2   : > { %v791_v23 = vmul.f32 %v3034_v21, %v789_v22 }
 0x1a4   : > { %793 = vrot.lane.b32.xlu0 %v791_v23, %s3340_s20 }
 0x216   : > { %v794_v25 = vpop.permute.xlu0 %793 }
 0x217   : > { %v796_v26 = vadd.f32 %v794_v25, %v786_v24 }
 0x219   : > { %3035 = vtanh.f32 %v796_v26 }
 0x226   : > { %v3036_v27 = vpop.eup %3035 }
 0x227   : > { %799 = vrot.lane.b32.xlu1 %v3036_v27, %s3339_s24 }
 0x299   : > { %v800_v28 = vpop.permute.xlu1 %799 }
 0x29a   : > { %v802_v29 = vmul.f32 %v3034_v21, %v800_v28  ;;  %v677_v21 = vadd.f32 %v2758_v55, %v3614_v11 }
 0x29c   : > { %804 = vrot.lane.b32.xlu1 %v802_v29, %s3340_s20 }
 0x30e   : > { %v805_v30 = vpop.permute.xlu1 %804 }
 0x30f   : > { %2785 = vmatmul.mubr.msk.f32.vlgmr.msra.gmra.mxu1 %vm704_vm2, %v805_v30 }
 0x310   : > { %2799 = vmatpush3.msra.mxu1 %v3562_v3  ;;  %2806 = vmatprep.mubr.msk.f32.mxu1 %vm3338_vm0, %v3337_v1 }
 0x311   : > { %2800 = vmatprep.subr.mxu1 %v3337_v1 }
 0x312   : > { %2801 = vmatpush3.msra.mxu1 %v3568_v5 }
 0x313   : > { %2802 = vmatprep.subr.mxu1 %v3337_v1 }
 0x314   : > { %2803 = vmatpush3.msra.mxu1 %v3577_v8 }
 0x315   : > { %2804 = vmatprep.subr.mxu1 %v3337_v1 }
 0x316   : > { %2805 = vmatpush3.msra.mxu1 %v3585_v9 }
 0x317   : > { %2820 = vmatprep.subr.mxu1 %v3337_v1 }
 0x3cf   : > { %v874_v32 = vpop.f32.mrf.mxu1 }
 0x3d0   : > { %v878_v33 = vadd.f32 %v874_v32, %v667_v31 }
 0x3d1   : > { %v2786_v34 = vpop.f32.mrf.mxu1 }
 0x3d2   : > { %3037 = vtanh.f32 %v878_v33  ;;  %v2626_v36 = vmul.f32 -1.442695, %v878_v33 }
 0x3d4   : > { %3039 = vpow2.f32 %v2626_v36 }
 0x3df   : > { %v3038_v35 = vpop.eup %3037 }
 0x3e0   : > { %888 = vrot.lane.b32.xlu0 %v3038_v35, %s3339_s24 }
 0x3e1   : > { %v3040_v37 = vpop.eup %3039 }
 0x3e2   : > { %v882_v38 = vadd.f32 1.0, %v3040_v37 }
 0x3e4   : > { %3041 = vrcp.f32 %v882_v38 }
 0x3f1   : > { %v3042_v39 = vpop.eup %3041 }
 0x3f2   : > { %v886_v42 = vmul.f32 %v3042_v39, %v796_v26 }
 0x452   : > { %v889_v40 = vpop.permute.xlu0 %888 }
 0x453   : > { %v891_v41 = vmul.f32 %v3042_v39, %v889_v40 }
 0x455   : > { %893 = vrot.lane.b32.xlu1 %v891_v41, %s3340_s20 }
 0x4c7   : > { %v894_v43 = vpop.permute.xlu1 %893 }
 0x4c8   : > { %v896_v44 = vadd.f32 %v894_v43, %v886_v42 }
 0x4ca   : > { %3043 = vtanh.f32 %v896_v44 }
 0x4d7   : > { %v3044_v51 = vpop.eup %3043 }
 0x4d8   : > { %899 = vrot.lane.b32.xlu0 %v3044_v51, %s3339_s24 }
 0x54a   : > { %v900_v52 = vpop.permute.xlu0 %899 }
 0x54b   : > { %v902_v53 = vmul.f32 %v3042_v39, %v900_v52  ;;  %v682_v39 = vadd.f32 %v3614_v11, %v3664_v58 }
 0x54d   : > { %904 = vrot.lane.b32.xlu1 %v902_v53, %s3340_s20 }
 0x5bf   : > { %v905_v54 = vpop.permute.xlu1 %904 }
 0x5c0   : > { %2796 = vmatmul.mubr.msk.f32.vlgmr.msra.gmra.mxu0 %vm704_vm2, %v905_v54 }
 0x5c1   : > { %2810 = vmatpush3.msra.mxu0 %v3562_v3  ;;  %2817 = vmatprep.mubr.msk.f32.mxu0 %vm3338_vm0, %v3337_v1 }
 0x5c2   : > { %2811 = vmatprep.subr.mxu0 %v3337_v1 }
 0x5c3   : > { %2812 = vmatpush3.msra.mxu0 %v3568_v5 }
 0x5c4   : > { %2813 = vmatprep.subr.mxu0 %v3337_v1 }
 0x5c5   : > { %2814 = vmatpush3.msra.mxu0 %v3577_v8 }
 0x5c6   : > { %2815 = vmatprep.subr.mxu0 %v3337_v1 }
 0x5c7   : > { %2816 = vmatpush3.msra.mxu0 %v3585_v9 }
 0x5c8   : > { %2831 = vmatprep.subr.mxu0 %v3337_v1 }
 0x680   : > { %v974_v62 = vpop.f32.mrf.mxu0 }
 0x681   : > { %v978_v63 = vadd.f32 %v974_v62, %v672_v61 }
 0x682   : > { %v2797_v0 = vpop.f32.mrf.mxu0 }
 0x683   : > { %3045 = vtanh.f32 %v978_v63  ;;  %v2628_v4 = vmul.f32 -1.442695, %v978_v63 }
 0x685   : > { %3047 = vpow2.f32 %v2628_v4 }
 0x690   : > { %v3046_v2 = vpop.eup %3045 }
 0x691   : > { %988 = vrot.lane.b32.xlu0 %v3046_v2, %s3339_s24 }
 0x692   : > { %v3048_v6 = vpop.eup %3047 }
 0x693   : > { %v982_v7 = vadd.f32 1.0, %v3048_v6 }
 0x695   : > { %3049 = vrcp.f32 %v982_v7 }
 0x6a2   : > { %v3050_v10 = vpop.eup %3049 }
 0x6a3   : > { %v986_v14 = vmul.f32 %v3050_v10, %v896_v44 }
 0x703   : > { %v989_v12 = vpop.permute.xlu0 %988 }
 0x704   : > { %v991_v13 = vmul.f32 %v3050_v10, %v989_v12 }
 0x706   : > { %993 = vrot.lane.b32.xlu1 %v991_v13, %s3340_s20 }
 0x778   : > { %v994_v15 = vpop.permute.xlu1 %993 }
 0x779   : > { %v996_v16 = vadd.f32 %v994_v15, %v986_v14  ;;  %v692_v15 = vadd.f32 %v3614_v11, %v3668_v60 }
 0x77b   : > { %3051 = vtanh.f32 %v996_v16 }
 0x788   : > { %v3052_v17 = vpop.eup %3051 }
 0x789   : > { %999 = vrot.lane.b32.xlu0 %v3052_v17, %s3339_s24 }
 0x7fb   : > { %v1000_v18 = vpop.permute.xlu0 %999 }
 0x7fc   : > { %v1002_v19 = vmul.f32 %v3050_v10, %v1000_v18 }
 0x7fe   : > { %1004 = vrot.lane.b32.xlu1 %v1002_v19, %s3340_s20 }
 0x870   : > { %v1005_v20 = vpop.permute.xlu1 %1004 }
 0x871   : > { %2807 = vmatmul.mubr.msk.f32.vlgmr.msra.gmra.mxu1 %vm704_vm2, %v1005_v20 }
 0x872   : > { %2821 = vmatpush3.msra.mxu1 %v3562_v3  ;;  %2828 = vmatprep.mubr.msk.f32.mxu1 %vm3338_vm0, %v3337_v1 }
 0x873   : > { %2822 = vmatprep.subr.mxu1 %v3337_v1 }
 0x874   : > { %2823 = vmatpush3.msra.mxu1 %v3568_v5 }
 0x875   : > { %2824 = vmatprep.subr.mxu1 %v3337_v1 }
 0x876   : > { %2825 = vmatpush3.msra.mxu1 %v3577_v8 }
 0x877   : > { %2826 = vmatprep.subr.mxu1 %v3337_v1 }
 0x878   : > { %2827 = vmatpush3.msra.mxu1 %v3585_v9 }
 0x879   : > { %2842 = vmatprep.subr.mxu1 %v3337_v1 }
 0x931   : > { %v1074_v22 = vpop.f32.mrf.mxu1 }
 0x932   : > { %v1078_v23 = vadd.f32 %v1074_v22, %v677_v21 }
 0x933   : > { %v2808_v24 = vpop.f32.mrf.mxu1 }
 0x934   : > { %3053 = vtanh.f32 %v1078_v23  ;;  %v2630_v26 = vmul.f32 -1.442695, %v1078_v23 }
 0x936   : > { %3055 = vpow2.f32 %v2630_v26 }
 0x941   : > { %v3054_v25 = vpop.eup %3053 }
 0x942   : > { %1088 = vrot.lane.b32.xlu0 %v3054_v25, %s3339_s24 }
 0x943   : > { %v3056_v27 = vpop.eup %3055 }
 0x944   : > { %v1082_v28 = vadd.f32 1.0, %v3056_v27 }
 0x946   : > { %3057 = vrcp.f32 %v1082_v28 }
 0x953   : > { %v3058_v29 = vpop.eup %3057 }
 0x954   : > { %v1086_v32 = vmul.f32 %v3058_v29, %v996_v16 }
 0x9b4   : > { %v1089_v30 = vpop.permute.xlu0 %1088 }
 0x9b5   : > { %v1091_v31 = vmul.f32 %v3058_v29, %v1089_v30 }
 0x9b7   : > { %1093 = vrot.lane.b32.xlu1 %v1091_v31, %s3340_s20 }
 0xa29   : > { %v1094_v33 = vpop.permute.xlu1 %1093 }
 0xa2a   : > { %v1096_v34 = vadd.f32 %v1094_v33, %v1086_v32  ;;  %v697_v32 = vadd.f32 %v3666_v59, %v3614_v11  ;;  %v1506_v59 = vld [vmem:[#allocation8 + $0x18] sm:$0xff] }
 0xa2c   : > { %3059 = vtanh.f32 %v1096_v34 }
 0xa39   : > { %v3060_v35 = vpop.eup %3059 }
 0xa3a   : > { %1099 = vrot.lane.b32.xlu0 %v3060_v35, %s3339_s24 }
 0xaac   : > { %v1100_v36 = vpop.permute.xlu0 %1099 }
 0xaad   : > { %v1102_v37 = vmul.f32 %v3058_v29, %v1100_v36 }
 0xaaf   : > { %1104 = vrot.lane.b32.xlu1 %v1102_v37, %s3340_s20 }
 0xb21   : > { %v1105_v38 = vpop.permute.xlu1 %1104 }
 0xb22   : > { %2818 = vmatmul.mubr.msk.f32.vlgmr.msra.gmra.mxu0 %vm704_vm2, %v1105_v38 }
 0xb23   : > { %2832 = vmatpush3.msra.mxu0 %v3562_v3  ;;  %2839 = vmatprep.mubr.msk.f32.mxu0 %vm3338_vm0, %v3337_v1 }
 0xb24   : > { %2833 = vmatprep.subr.mxu0 %v3337_v1 }
 0xb25   : > { %2834 = vmatpush3.msra.mxu0 %v3568_v5 }
 0xb26   : > { %2835 = vmatprep.subr.mxu0 %v3337_v1 }
 0xb27   : > { %2836 = vmatpush3.msra.mxu0 %v3577_v8 }
 0xb28   : > { %2837 = vmatprep.subr.mxu0 %v3337_v1 }
 0xb29   : > { %2838 = vmatpush3.msra.mxu0 %v3585_v9 }
 0xb2a   : > { %2853 = vmatprep.subr.mxu0 %v3337_v1 }
 0xbe2   : > { %v1174_v40 = vpop.f32.mrf.mxu0 }
 0xbe3   : > { %v1178_v41 = vadd.f32 %v1174_v40, %v682_v39 }
 0xbe4   : > { %v2819_v42 = vpop.f32.mrf.mxu0 }
 0xbe5   : > { %3061 = vtanh.f32 %v1178_v41  ;;  %v2632_v44 = vmul.f32 -1.442695, %v1178_v41 }
 0xbe7   : > { %3063 = vpow2.f32 %v2632_v44 }
 0xbf2   : > { %v3062_v43 = vpop.eup %3061 }
 0xbf3   : > { %1188 = vrot.lane.b32.xlu0 %v3062_v43, %s3339_s24 }
 0xbf4   : > { %v3064_v45 = vpop.eup %3063 }
 0xbf5   : > { %v1182_v46 = vadd.f32 1.0, %v3064_v45  ;;  %v1505_v45 = vld [vmem:[#allocation8 + $0x10] sm:$0xff] }
 0xbf7   : > { %3065 = vrcp.f32 %v1182_v46  ;;  %v3741_v46 = vld [vmem:[#allocation10 + $0x18] sm:$0xff] }
 0xc04   : > { %v3066_v47 = vpop.eup %3065 }
 0xc05   : > { %v1186_v50 = vmul.f32 %v3066_v47, %v1096_v34 }
 0xc65   : > { %v1189_v48 = vpop.permute.xlu0 %1188 }
 0xc66   : > { %v1191_v49 = vmul.f32 %v3066_v47, %v1189_v48  ;;  %v1504_v48 = vld [vmem:[#allocation8 + $0x8] sm:$0xff] }
 0xc68   : > { %1193 = vrot.lane.b32.xlu1 %v1191_v49, %s3340_s20  ;;  %v1503_v49 = vld [vmem:[#allocation8] sm:$0xff] }
 0xcda   : > { %v1194_v51 = vpop.permute.xlu1 %1193 }
 0xcdb   : > { %v1196_v52 = vadd.f32 %v1194_v51, %v1186_v50  ;;  %v3754_v51 = vld [vmem:[#allocation10 + $0x8] sm:$0xff] }
 0xcdd   : > { %3067 = vtanh.f32 %v1196_v52 }
 0xcea   : > { %v3068_v53 = vpop.eup %3067 }
 0xceb   : > { %1199 = vrot.lane.b32.xlu0 %v3068_v53, %s3339_s24 }
 0xd5d   : > { %v1200_v54 = vpop.permute.xlu0 %1199 }
 0xd5e   : > { %v1202_v55 = vmul.f32 %v3066_v47, %v1200_v54  ;;  %v3744_v47 = vld [vmem:[#allocation10 + $0x10] sm:$0xff] }
 0xd60   : > { %1204 = vrot.lane.b32.xlu1 %v1202_v55, %s3340_s20 }
 0xdd2   : > { %v1205_v56 = vpop.permute.xlu1 %1204 }
 0xdd3   : > { %2829 = vmatmul.mubr.msk.f32.vlgmr.msra.gmra.mxu1 %vm704_vm2, %v1205_v56 }
 0xdd4   : > { %2843 = vmatpush3.msra.mxu1 %v3562_v3  ;;  %2850 = vmatprep.mubr.msk.f32.mxu1 %vm3338_vm0, %v3337_v1  ;;  %v687_v3 = vadd.f32 %v3662_v57, %v3614_v11 }
 0xdd5   : > { %2844 = vmatprep.subr.mxu1 %v3337_v1 }
 0xdd6   : > { %2845 = vmatpush3.msra.mxu1 %v3568_v5 }
 0xdd7   : > { %2846 = vmatprep.subr.mxu1 %v3337_v1 }
 0xdd8   : > { %2847 = vmatpush3.msra.mxu1 %v3577_v8 }
 0xdd9   : > { %2848 = vmatprep.subr.mxu1 %v3337_v1 }
 0xdda   : > { %2849 = vmatpush3.msra.mxu1 %v3585_v9 }
 0xddb   : > { %2864 = vmatprep.subr.mxu1 %v3337_v1 }
 0xe93   : > { %v1274_v58 = vpop.f32.mrf.mxu1 }
 0xe94   : > { %v1278_v61 = vadd.f32 %v1274_v58, %v687_v3  ;;  %v2639_v58 = vld [vmem:[%s3955_s6] ss:$0 sm:$0xff] }
 0xe95   : > { %v2830_v62 = vpop.f32.mrf.mxu1 }
 0xe96   : > { %3069 = vtanh.f32 %v1278_v61  ;;  %v2634_v5 = vmul.f32 -1.442695, %v1278_v61 }
 0xe98   : > { %3071 = vpow2.f32 %v2634_v5 }
 0xea3   : > { %v3070_v63 = vpop.eup %3069 }
 0xea4   : > { %1288 = vrot.lane.b32.xlu0 %v3070_v63, %s3339_s24 }
 0xea5   : > { %v3072_v0 = vpop.eup %3071 }
 0xea6   : > { %v1282_v8 = vadd.f32 1.0, %v3072_v0 }
 0xea8   : > { %3073 = vrcp.f32 %v1282_v8 }
 0xeb5   : > { %v3074_v2 = vpop.eup %3073 }
 0xeb6   : > { %v1286_v6 = vmul.f32 %v3074_v2, %v1196_v52  ;;  %v3756_v52 = vld [vmem:[#allocation10] sm:$0xff] }
 0xf16   : > { %v1289_v4 = vpop.permute.xlu0 %1288 }
 0xf17   : > { %v1291_v9 = vmul.f32 %v3074_v2, %v1289_v4 }
 0xf19   : > { %1293 = vrot.lane.b32.xlu1 %v1291_v9, %s3340_s20 }
 0xf8b   : > { %v1294_v7 = vpop.permute.xlu1 %1293 }
 0xf8c   : > { %v1296_v57 = vadd.f32 %v1294_v7, %v1286_v6 }
 0xf8e   : > { %3075 = vtanh.f32 %v1296_v57 }
 0xf9b   : > { %v3076_v10 = vpop.eup %3075 }
 0xf9c   : > { %1299 = vrot.lane.b32.xlu0 %v3076_v10, %s3339_s24 }
0x100e   : > { %v1300_v12 = vpop.permute.xlu0 %1299 }
0x100f   : > { %v1302_v13 = vmul.f32 %v3074_v2, %v1300_v12 }
0x1011   : > { %1304 = vrot.lane.b32.xlu1 %v1302_v13, %s3340_s20 }
0x1083   : > { %v1305_v14 = vpop.permute.xlu1 %1304 }
0x1084   : > { %2840 = vmatmul.mubr.msk.f32.vlgmr.msra.gmra.mxu0 %vm704_vm2, %v1305_v14 }
0x1085   : > { %2861 = vmatprep.mubr.msk.f32.mxu0 %vm3338_vm0, %v3337_v1  ;;  %2854 = vmatpush3.msra.mxu0 %v1506_v59 }
0x1086   : > { %2855 = vmatprep.subr.mxu0 %v3337_v1 }
0x1087   : > { %2856 = vmatpush3.msra.mxu0 %v1505_v45 }
0x1088   : > { %2857 = vmatprep.subr.mxu0 %v3337_v1 }
0x1089   : > { %2858 = vmatpush3.msra.mxu0 %v1504_v48 }
0x108a   : > { %2859 = vmatprep.subr.mxu0 %v3337_v1 }
0x108b   : > { %2860 = vmatpush3.msra.mxu0 %v1503_v49 }
0x108c   : > { %2875 = vmatprep.subr.mxu0 %v3337_v1 }
0x1144   : > { %v1374_v16 = vpop.f32.mrf.mxu0 }
0x1145   : > { %v1378_v17 = vadd.f32 %v1374_v16, %v692_v15 }
0x1146   : > { %v2841_v18 = vpop.f32.mrf.mxu0 }
0x1147   : > { %3077 = vtanh.f32 %v1378_v17  ;;  %v2636_v20 = vmul.f32 -1.442695, %v1378_v17 }
0x1149   : > { %3079 = vpow2.f32 %v2636_v20 }
0x1154   : > { %v3078_v19 = vpop.eup %3077 }
0x1155   : > { %1388 = vrot.lane.b32.xlu0 %v3078_v19, %s3339_s24 }
0x1156   : > { %v3080_v21 = vpop.eup %3079 }
0x1157   : > { %v1382_v22 = vadd.f32 1.0, %v3080_v21 }
0x1159   : > { %3081 = vrcp.f32 %v1382_v22 }
0x1166   : > { %v3082_v23 = vpop.eup %3081 }
0x1167   : > { %v1386_v26 = vmul.f32 %v3082_v23, %v1296_v57 }
0x11c7   : > { %v1389_v24 = vpop.permute.xlu0 %1388 }
0x11c8   : > { %v1391_v25 = vmul.f32 %v3082_v23, %v1389_v24 }
0x11ca   : > { %1393 = vrot.lane.b32.xlu1 %v1391_v25, %s3340_s20 }
0x123c   : > { %v1394_v27 = vpop.permute.xlu1 %1393 }
0x123d   : > { %v1396_v60 = vadd.f32 %v1394_v27, %v1386_v26 }
0x123f   : > { %3083 = vtanh.f32 %v1396_v60 }
0x124c   : > { %v3084_v28 = vpop.eup %3083 }
0x124d   : > { %1399 = vrot.lane.b32.xlu0 %v3084_v28, %s3339_s24 }
0x12bf   : > { %v1400_v29 = vpop.permute.xlu0 %1399 }
0x12c0   : > { %v1402_v30 = vmul.f32 %v3082_v23, %v1400_v29 }
0x12c2   : > { %1404 = vrot.lane.b32.xlu1 %v1402_v30, %s3340_s20 }
0x1334   : > { %v1405_v31 = vpop.permute.xlu1 %1404 }
0x1335   : > { %2851 = vmatmul.mubr.msk.f32.vlgmr.msra.gmra.mxu1 %vm704_vm2, %v1405_v31 }
0x1336   : > { %2872 = vmatprep.mubr.msk.f32.mxu1 %vm3338_vm0, %v3337_v1  ;;  %2865 = vmatpush3.msra.mxu1 %v3741_v46 }
0x1337   : > { %2866 = vmatprep.subr.mxu1 %v3337_v1 }
0x1338   : > { %2867 = vmatpush3.msra.mxu1 %v3744_v47 }
0x1339   : > { %2868 = vmatprep.subr.mxu1 %v3337_v1 }
0x133a   : > { %2869 = vmatpush3.msra.mxu1 %v3754_v51 }
0x133b   : > { %2870 = vmatprep.subr.mxu1 %v3337_v1 }
0x133c   : > { %2871 = vmatpush3.msra.mxu1 %v3756_v52 }
0x133d   : > { %2873 = vmatmul.mubr.f32.vlgmr.msra.gmra.mxu1 %v3337_v1  ;;  %2886 = vmatprep.subr.mxu1 %v3337_v1 }
0x133e   : > { %2887 = vmatpush3.msra.mxu1 %v3741_v46  ;;  %2894 = vmatprep.mubr.msk.f32.mxu1 %vm3338_vm0, %v3337_v1 }
0x133f   : > { %2888 = vmatprep.subr.mxu1 %v3337_v1 }
0x1340   : > { %2889 = vmatpush3.msra.mxu1 %v3744_v47 }
0x1341   : > { %2890 = vmatprep.subr.mxu1 %v3337_v1 }
0x1342   : > { %2891 = vmatpush3.msra.mxu1 %v3754_v51 }
0x1343   : > { %2892 = vmatprep.subr.mxu1 %v3337_v1 }
0x1344   : > { %2893 = vmatpush3.msra.mxu1 %v3756_v52 }
0x13f5   : > { %v1474_v33 = vpop.f32.mrf.mxu1 }
0x13f6   : > { %v1478_v34 = vadd.f32 %v1474_v33, %v697_v32 }
0x13f7   : > { %v2852_v35 = vpop.f32.mrf.mxu1 }
0x13f8   : > { %3085 = vtanh.f32 %v1478_v34  ;;  %v2638_v37 = vmul.f32 -1.442695, %v1478_v34 }
0x13fa   : > { %3087 = vpow2.f32 %v2638_v37 }
0x13fd   : > { %v1664_v56 = vpop.f32.mrf.mxu1 }
0x13ff   : > { %v2874_v3 = vpop.f32.mrf.mxu1 }
0x1405   : > { %v3086_v36 = vpop.eup %3085 }
0x1406   : > { %1488 = vrot.lane.b32.xlu0 %v3086_v36, %s3339_s24 }
0x1407   : > { %v3088_v38 = vpop.eup %3087 }
0x1408   : > { %v1482_v39 = vadd.f32 1.0, %v3088_v38 }
0x140a   : > { %3089 = vrcp.f32 %v1482_v39 }
0x1417   : > { %v3090_v40 = vpop.eup %3089 }
0x1418   : > { %v1486_v43 = vmul.f32 %v3090_v40, %v1396_v60 }
0x1478   : > { %v1489_v41 = vpop.permute.xlu0 %1488 }
0x1479   : > { %v1491_v42 = vmul.f32 %v3090_v40, %v1489_v41 }
0x147b   : > { %1493 = vrot.lane.b32.xlu1 %v1491_v42, %s3340_s20 }
0x14ed   : > { %v1494_v44 = vpop.permute.xlu1 %1493 }
0x14ee   : > { %v1496_v11 = vadd.f32 %v1494_v44, %v1486_v43 }
0x14f0   : > { %3091 = vtanh.f32 %v1496_v11 }
0x14fd   : > { %v3092_v50 = vpop.eup %3091 }
0x14fe   : > { %1499 = vrot.lane.b32.xlu0 %v3092_v50, %s3339_s24 }
0x1570   : > { %v1500_v53 = vpop.permute.xlu0 %1499 }
0x1571   : > { %v3771_v54 = vmul.f32 %v3090_v40, %v1500_v53 }
0x1573   : > { %1515 = vrot.lane.b32.xlu1 %v3771_v54, %s3340_s20 }
0x15e5   : > { %v1516_v55 = vpop.permute.xlu1 %1515 }
0x15e6   : > { %2862 = vmatmul.mubr.msk.f32.vlgmr.msra.gmra.mxu0 %vm704_vm2, %v1516_v55 }
0x15e7   : > { %2876 = vmatpush3.msra.mxu0 %v3741_v46  ;;  %2883 = vmatprep.mubr.msk.f32.mxu0 %vm3338_vm0, %v3337_v1 }
0x15e8   : > { %2877 = vmatprep.subr.mxu0 %v3337_v1 }
0x15e9   : > { %2878 = vmatpush3.msra.mxu0 %v3744_v47 }
0x15ea   : > { %2879 = vmatprep.subr.mxu0 %v3337_v1 }
0x15eb   : > { %2880 = vmatpush3.msra.mxu0 %v3754_v51 }
0x15ec   : > { %2881 = vmatprep.subr.mxu0 %v3337_v1 }
0x15ed   : > { %2882 = vmatpush3.msra.mxu0 %v3756_v52 }
0x15ee   : > { %2897 = vmatprep.subr.mxu0 %v3337_v1 }
0x16a6   : > { %v1585_v61 = vpop.f32.mrf.mxu0 }
0x16a7   : > { %v1586_v62 = vadd.f32 %v2639_v58, %v1585_v61 }
0x16a8   : > { %v2863_v63 = vpop.f32.mrf.mxu0 }
0x16a9   : > { %v1594_v5 = vrot.slane %v1586_v62, 3  ;;  %v1693_v0 = vrot.slane %v1586_v62, 1  ;;  %v1695_v8 = vrot.slane %v1586_v62, 4  ;;  %v1798_v2 = vrot.slane %v1586_v62, 2 }
0x16aa   : > { %v1800_v4 = vrot.slane %v1586_v62, 5  ;;  %v1903_v9 = vrot.slane %v1586_v62, 6 }
0x16ab   : > { %v1597_v6 = vsel %vm1596_vm3, %v1586_v62, %v1594_v5  ;;  %v1697_v7 = vsel %vm1596_vm3, %v1693_v0, %v1695_v8 }
0x16ac   : > { %v1668_v57 = vadd.f32 %v1664_v56, %v1597_v6  ;;  %v1802_v10 = vsel %vm1596_vm3, %v1798_v2, %v1800_v4  ;;  %v3790_v12 = vsel %vm1596_vm3, %v1594_v5, %v1903_v9 }
0x16ae   : > { %3093 = vtanh.f32 %v1668_v57  ;;  %v2641_v14 = vmul.f32 -1.442695, %v1668_v57 }
0x16b0   : > { %3095 = vpow2.f32 %v2641_v14 }
0x16bb   : > { %v3094_v13 = vpop.eup %3093 }
0x16bc   : > { %1678 = vrot.lane.b32.xlu0 %v3094_v13, %s3339_s24 }
0x16bd   : > { %v3096_v15 = vpop.eup %3095 }
0x16be   : > { %v1672_v16 = vadd.f32 1.0, %v3096_v15 }
0x16c0   : > { %3097 = vrcp.f32 %v1672_v16 }
0x16cd   : > { %v3098_v17 = vpop.eup %3097 }
0x16ce   : > { %v1676_v20 = vmul.f32 0.0, %v3098_v17 }
0x172e   : > { %v1679_v18 = vpop.permute.xlu0 %1678 }
0x172f   : > { %v1681_v19 = vmul.f32 %v3098_v17, %v1679_v18  ;;  %v2017_v18 = vmul.f32 %v3771_v54, %v3771_v54 }
0x1731   : > { %1683 = vrot.lane.b32.xlu1 %v1681_v19, %s3340_s20 }
0x17a3   : > { %v1684_v21 = vpop.permute.xlu1 %1683 }
0x17a4   : > { %v1686_v22 = vadd.f32 %v1684_v21, %v1676_v20 }
0x17a6   : > { %3099 = vtanh.f32 %v1686_v22 }
0x17b3   : > { %v3100_v23 = vpop.eup %3099 }
0x17b4   : > { %1689 = vrot.lane.b32.xlu0 %v3100_v23, %s3339_s24 }
0x1826   : > { %v1690_v24 = vpop.permute.xlu0 %1689 }
0x1827   : > { %v1692_v25 = vmul.f32 %v3098_v17, %v1690_v24 }
0x1829   : > { %1699 = vrot.lane.b32.xlu1 %v1692_v25, %s3340_s20 }
0x189b   : > { %v1700_v26 = vpop.permute.xlu1 %1699 }
0x189c   : > { %2884 = vmatmul.mubr.msk.f32.vlgmr.msra.gmra.mxu0 %vm704_vm2, %v1700_v26 }
0x189d   : > { %2898 = vmatpush3.msra.mxu0 %v3741_v46  ;;  %2905 = vmatprep.mubr.msk.f32.mxu0 %vm3338_vm0, %v3337_v1 }
0x189e   : > { %2899 = vmatprep.subr.mxu0 %v3337_v1 }
0x189f   : > { %2900 = vmatpush3.msra.mxu0 %v3744_v47 }
0x18a0   : > { %2901 = vmatprep.subr.mxu0 %v3337_v1 }
0x18a1   : > { %2902 = vmatpush3.msra.mxu0 %v3754_v51 }
0x18a2   : > { %2903 = vmatprep.subr.mxu0 %v3337_v1 }
0x18a3   : > { %2904 = vmatpush3.msra.mxu0 %v3756_v52 }
0x18a4   : > { %2928 = vmatprep.subr.mxu0 %v3337_v1 }
0x195c   : > { %v1769_v27 = vpop.f32.mrf.mxu0 }
0x195d   : > { %v1773_v60 = vadd.f32 %v1769_v27, %v1697_v7  ;;  %v2006_v27 = vrot.slane %v3771_v54, 1 }
0x195e   : > { %v2885_v28 = vpop.f32.mrf.mxu0 }
0x195f   : > { %3101 = vtanh.f32 %v1773_v60  ;;  %v2643_v30 = vmul.f32 -1.442695, %v1773_v60  ;;  %v2008_v60 = vmul.f32 %v2006_v27, %v3771_v54  ;;  %v2256_v27 = vld [vmem:[%s3960_s11 + $0x8] sm:$0xff] }
0x1961   : > { %3103 = vpow2.f32 %v2643_v30 }
0x196c   : > { %v3102_v29 = vpop.eup %3101 }
0x196d   : > { %1783 = vrot.lane.b32.xlu0 %v3102_v29, %s3339_s24 }
0x196e   : > { %v3104_v31 = vpop.eup %3103 }
0x196f   : > { %v1777_v32 = vadd.f32 1.0, %v3104_v31 }
0x1971   : > { %3105 = vrcp.f32 %v1777_v32 }
0x197e   : > { %v3106_v33 = vpop.eup %3105 }
0x197f   : > { %v1781_v36 = vmul.f32 %v3106_v33, %v1686_v22 }
0x19df   : > { %v1784_v34 = vpop.permute.xlu0 %1783 }
0x19e0   : > { %v1786_v35 = vmul.f32 %v3106_v33, %v1784_v34 }
0x19e2   : > { %1788 = vrot.lane.b32.xlu1 %v1786_v35, %s3340_s20 }
0x1a54   : > { %v1789_v37 = vpop.permute.xlu1 %1788 }
0x1a55   : > { %v1791_v38 = vadd.f32 %v1789_v37, %v1781_v36 }
0x1a57   : > { %3107 = vtanh.f32 %v1791_v38 }
0x1a64   : > { %v3108_v39 = vpop.eup %3107 }
0x1a65   : > { %1794 = vrot.lane.b32.xlu0 %v3108_v39, %s3339_s24 }
0x1ad7   : > { %v1795_v40 = vpop.permute.xlu0 %1794 }
0x1ad8   : > { %v1797_v41 = vmul.f32 %v3106_v33, %v1795_v40 }
0x1ada   : > { %1804 = vrot.lane.b32.xlu1 %v1797_v41, %s3340_s20  ;;  %v2286_v41 = vld [vmem:[%s3961_s12 + $0x18] sm:$0xff] }
0x1b4c   : > { %v1805_v42 = vpop.permute.xlu1 %1804 }
0x1b4d   : > { %2895 = vmatmul.mubr.msk.f32.vlgmr.msra.gmra.mxu1 %vm704_vm2, %v1805_v42 }
0x1c0d   : > { %v1874_v43 = vpop.f32.mrf.mxu1 }
0x1c0e   : > { %v1878_v44 = vadd.f32 %v1874_v43, %v1802_v10  ;;  %v2290_v43 = vadd.f32 1e-05, %v2286_v41 }
0x1c0f   : > { %v2896_v11 = vpop.f32.mrf.mxu1 }
0x1c10   : > { %3109 = vtanh.f32 %v1878_v44  ;;  %v2645_v45 = vmul.f32 -1.442695, %v1878_v44  ;;  %vm2316_vm1 = vcmp.eq.f32.partialorder %v2290_v43, 0.0 }
0x1c12   : > { %3111 = vpow2.f32 %v2645_v45 }
0x1c1d   : > { %v3110_v59 = vpop.eup %3109 }
0x1c1e   : > { %1888 = vrot.lane.b32.xlu0 %v3110_v59, %s3339_s24  ;;  %v2285_v59 = vld [vmem:[%s3961_s12 + $0x10] sm:$0xff] }
0x1c1f   : > { %v3112_v46 = vpop.eup %3111 }
0x1c20   : > { %v1882_v47 = vadd.f32 1.0, %v3112_v46  ;;  %v2120_v46 = vld [vmem:[#allocation2 + $0x30] sm:$0x3] }
0x1c21   : > { %2908 = vmatprep.subr.msk.mxu1 %vm2162_vm14, %v2120_v46 }
0x1c22   : > { %3113 = vrcp.f32 %v1882_v47  ;;  %v2119_v47 = vld [vmem:[#allocation2 + $0x28] sm:$0xff]  ;;  %2909 = vmatpush3.msk.msra.mxu1 %vm2162_vm14, %v2120_v46  ;;  %vm2112_vm14 = vcmask 8200  }
0x1c23   : > { %2910 = vmatprep.subr.mxu1 %v2119_v47 }
0x1c24   : > { %2911 = vmatpush3.msra.mxu1 %v2119_v47 }
0x1c2f   : > { %v3114_v48 = vpop.eup %3113 }
0x1c30   : > { %v1886_v51 = vmul.f32 %v3114_v48, %v1791_v38 }
0x1c90   : > { %v1889_v49 = vpop.permute.xlu0 %1888 }
0x1c91   : > { %v1891_v50 = vmul.f32 %v3114_v48, %v1889_v49  ;;  %v2284_v49 = vld [vmem:[%s3961_s12 + $0x8] sm:$0xff] }
0x1c93   : > { %1893 = vrot.lane.b32.xlu1 %v1891_v50, %s3340_s20  ;;  %v2118_v50 = vld [vmem:[#allocation2 + $0x20] sm:$0xff] }
0x1c94   : > { %2912 = vmatprep.subr.mxu1 %v2118_v50 }
0x1c95   : > { %2913 = vmatpush3.msra.mxu1 %v2118_v50 }
0x1d05   : > { %v1894_v52 = vpop.permute.xlu1 %1893 }
0x1d06   : > { %v1896_v53 = vadd.f32 %v1894_v52, %v1886_v51  ;;  %v2288_v51 = vadd.f32 1e-05, %v2284_v49  ;;  %v2117_v52 = vld [vmem:[#allocation2 + $0x18] sm:$0xff] }
0x1d07   : > { %2914 = vmatprep.subr.mxu1 %v2117_v52 }
0x1d08   : > { %3115 = vtanh.f32 %v1896_v53  ;;  %2915 = vmatpush3.msra.mxu1 %v2117_v52 }
0x1d15   : > { %v3116_v55 = vpop.eup %3115 }
0x1d16   : > { %1899 = vrot.lane.b32.xlu0 %v3116_v55, %s3339_s24  ;;  %v2283_v55 = vld [vmem:[%s3961_s12] sm:$0xff] }
0x1d88   : > { %v1900_v56 = vpop.permute.xlu0 %1899 }
0x1d89   : > { %v1902_v3 = vmul.f32 %v3114_v48, %v1900_v56  ;;  %v2289_v48 = vadd.f32 1e-05, %v2285_v59  ;;  %v2115_v56 = vld [vmem:[#allocation2 + $0x8] sm:$0xff] }
0x1d8b   : > { %1907 = vrot.lane.b32.xlu1 %v1902_v3, %s3340_s20  ;;  %v2287_v3 = vadd.f32 1e-05, %v2283_v55  ;;  %vm2307_vm3 = vcmp.eq.f32.partialorder %v2289_v48, inf }
0x1dfd   : > { %v1908_v58 = vpop.permute.xlu1 %1907 }
0x1dfe   : > { %2906 = vmatmul.mubr.msk.f32.vlgmr.msra.gmra.mxu0 %vm704_vm2, %v1908_v58 }
0x1dff   : > { %2936 = vmatprep.mubr.msk.f32.mxu0 %vm3338_vm0, %v3337_v1  ;;  %vm2314_vm0 = vcmp.eq.f32.partialorder %v2290_v43, inf }
0x1ebe   : > { %v1977_v61 = vpop.f32.mrf.mxu0 }
0x1ebf   : > { %v1981_v62 = vadd.f32 %v1977_v61, %v3790_v12 }
0x1ec0   : > { %v2907_v63 = vpop.f32.mrf.mxu0 }
0x1ec1   : > { %3117 = vtanh.f32 %v1981_v62  ;;  %v2647_v0 = vmul.f32 -1.442695, %v1981_v62  ;;  %v2121_v62 = vld [vmem:[#allocation11] sm:$0xff]  ;;  %v2317_v63 = vand.u32 2147483648, %v2290_v43 }
0x1ec2   : > { %2922 = vmatprep.mubr.msk.f32.mxu1 %vm2149_vm15, %v2121_v62  ;;  %v2124_v62 = vld [vmem:[#allocation11 + $0x18] sm:$0xff] }
0x1ec3   : > { %3119 = vpow2.f32 %v2647_v0 }
0x1ece   : > { %v3118_v5 = vpop.eup %3117 }
0x1ecf   : > { %1991 = vrot.lane.b32.xlu0 %v3118_v5, %s3339_s24 }
0x1ed0   : > { %v3120_v8 = vpop.eup %3119 }
0x1ed1   : > { %v1985_v2 = vadd.f32 1.0, %v3120_v8 }
0x1ed3   : > { %3121 = vrcp.f32 %v1985_v2  ;;  %v3341_v2 = vmov 0  }
0x1ed4   : > { %3027 = vset.pattern.permute.xlu0 %v3341_v2  ;;  %3028 = vset.pattern.permute.xlu1 %v3341_v2 }
0x1ee0   : > { %v3122_v4 = vpop.eup %3121 }
0x1ee1   : > { %v1989_v7 = vmul.f32 %v3122_v4, %v1896_v53  ;;  %v2116_v53 = vld [vmem:[#allocation2 + $0x10] sm:$0xff] }
0x1ee2   : > { %2916 = vmatprep.subr.mxu1 %v2116_v53 }
0x1ee3   : > { %2917 = vmatpush3.msra.mxu1 %v2116_v53 }
0x1ee4   : > { %2918 = vmatprep.subr.mxu1 %v2115_v56 }
0x1ee5   : > { %2919 = vmatpush3.msra.mxu1 %v2115_v56 }
0x1f41   : > { %v1992_v9 = vpop.permute.xlu0 %1991 }
0x1f42   : > { %v1994_v6 = vmul.f32 %v3122_v4, %v1992_v9 }
0x1f44   : > { %1996 = vrot.lane.b32.xlu1 %v1994_v6, %s3340_s20 }
0x1fb6   : > { %v1997_v57 = vpop.permute.xlu1 %1996 }
0x1fb7   : > { %v1999_v10 = vadd.f32 %v1997_v57, %v1989_v7  ;;  %v2310_v57 = vand.u32 2147483648, %v2289_v48 }
0x1fb9   : > { %3123 = vtanh.f32 %v1999_v10 }
0x1fc6   : > { %v3124_v12 = vpop.eup %3123 }
0x1fc7   : > { %2002 = vrot.lane.b32.xlu0 %v3124_v12, %s3339_s24  ;;  %s3342_s24 = smov 1  }
0x2039   : > { %v2003_v13 = vpop.permute.xlu0 %2002 }
0x203a   : > { %v2005_v14 = vmul.f32 %v3122_v4, %v2003_v13  ;;  %v2303_v13 = vand.u32 2147483648, %v2288_v51 }
0x203c   : > { %v2052_v15 = vrot.slane %v2005_v14, 1  ;;  %v2063_v16 = vmul.f32 %v2005_v14, %v2005_v14 }
0x203e   : > { %2065 = vrot.lane.b32.xlu1 %v2063_v16, %s3340_s20  ;;  %v2054_v17 = vmul.f32 %v2052_v15, %v2005_v14  ;;  %v2128_v16 = vld [vmem:[%s3957_s8 + $0x18] sm:$0xff] }
0x2040   : > { %2056 = vrot.lane.b32.xlu0 %v2054_v17, %s3340_s20 }
0x2042   : > { %2019 = vrot.lane.b32.xlu1 %v2017_v18, %s3340_s20 }
0x20b0   : > { %v2066_v19 = vpop.permute.xlu1 %2065 }
0x20b1   : > { %v2068_v20 = vsel %vm2059_vm4, %v2066_v19, 0.0  ;;  %v2079_v21 = vsel %vm2078_vm5, %v2066_v19, 0.0  ;;  %vm2300_vm5 = vcmp.eq.f32.partialorder %v2288_v51, inf }
0x20b2   : > { %2069 = vadd.xlane.f32.xlu1 %v2068_v20  ;;  %2080 = vadd.xlane.f32.xlu0 %v2079_v21  ;;  %v2057_v22 = vpop.permute.xlu0 %2056  ;;  %v2296_v20 = vand.u32 2147483648, %v2287_v3  ;;  %v2126_v21 = vld [vmem:[%s3957_s8 + $0x8] sm:$0xff] }
0x20b3   : > { %v2060_v23 = vsel %vm2059_vm4, %v2057_v22, 0.0  ;;  %vm2309_vm4 = vcmp.eq.f32.partialorder %v2289_v48, 0.0 }
0x20b4   : > { %v2020_v24 = vpop.permute.xlu1 %2019 }
0x20b5   : > { %v2033_v25 = vsel %vm2032_vm6, %v2020_v24, 0.0  ;;  %v2022_v26 = vsel %vm2013_vm7, %v2020_v24, 0.0  ;;  %vm2302_vm6 = vcmp.eq.f32.partialorder %v2288_v51, 0.0 }
0x20b6   : > { %2061 = vadd.xlane.f32.xlu1 %v2060_v23 }
0x20ba   : > { %2034 = vadd.xlane.f32.xlu1 %v2033_v25  ;;  %v2125_v25 = vld [vmem:[%s3957_s8] sm:$0xff] }
0x20be   : > { %2023 = vadd.xlane.f32.xlu1 %v2022_v26  ;;  %v2127_v26 = vld [vmem:[%s3957_s8 + $0x10] sm:$0xff] }
0x20c8   : > { %2010 = vrot.lane.b32.xlu0 %v2008_v60, %s3340_s20  ;;  %v2258_v60 = vld [vmem:[%s3960_s11 + $0x18] sm:$0xff]  ;;  %s547_s20 = scalar_lea.vmem [#allocation13], %s546_s17 }
0x20c9   : > { %s2505_s25 = sshll.u32 %s547_s20, 4  ;;  %s2506_s25 = int_to_ptr.vmem [resolvable:$true] %s2505_s25 }
0x20ca   : > { %s3257_s28 = scalar_lea.vmem %s2506_s25, 16  ;;  %p3264_p4 = scmp.lt.s32.totalorder %s2506_s25, %s3262_s16 }
0x20cb   : > { %p3258_p9 = scmp.ne.s32.totalorder %s2506_s25, %s3257_s28 }
0x20cd   : > { %p3259_p12 = pnand %p3258_p9, %p3465_p5 }
0x20cf   : > { %p3260_p13 = pneg %p3259_p12 }
0x213b   : > { %v2070_v28 = vpop.xlane.xlu1 %2069  ;;  %v2081_v29 = vpop.xlane.xlu0 %2080 }
0x213c   : > { %3125 = vrsqrt.f32 %v2070_v28  ;;  %vm2073_vm8 = vcmp.eq.f32.partialorder %v2070_v28, inf  ;;  %v2076_v37 = vand.u32 2147483648, %v2070_v28  ;;  %vm2084_vm11 = vcmp.eq.f32.partialorder %v2081_v29, inf }
0x213d   : > { %3127 = vrsqrt.f32 %v2081_v29  ;;  %v2087_v54 = vand.u32 2147483648, %v2081_v29  ;;  %vm2075_vm12 = vcmp.eq.f32.partialorder %v2070_v28, 0.0  ;;  %vm2086_vm13 = vcmp.eq.f32.partialorder %v2081_v29, 0.0 }
0x213e   : > { %3129 = vrsqrt.f32 %v2290_v43 }
0x213f   : > { %v2011_v30 = vpop.permute.xlu0 %2010  ;;  %v2062_v8 = vpop.xlane.xlu1 %2061 }
0x2140   : > { %v2014_v31 = vsel %vm2013_vm7, %v2011_v30, 0.0  ;;  %vm2293_vm7 = vcmp.eq.f32.partialorder %v2287_v3, inf  ;;  %v2378_v30 = vld [vmem:[%s3959_s10 + $0x18] sm:$0xff] }
0x2141   : > { %2015 = vadd.xlane.f32.xlu1 %v2014_v31  ;;  %v2350_v31 = vld [vmem:[%s3958_s9 + $0x18] sm:$0xff] }
0x2149   : > { %v3126_v32 = vpop.eup %3125 }
0x214a   : > { %v3128_v33 = vpop.eup %3127  ;;  %v2072_v34 = vmul.f32 %v3126_v32, %v2070_v28  ;;  %v2377_v32 = vld [vmem:[%s3959_s10 + $0x10] sm:$0xff] }
0x214b   : > { %v2083_v35 = vmul.f32 %v3128_v33, %v2081_v29  ;;  %v3130_v58 = vpop.eup %3129  ;;  %v2349_v33 = vld [vmem:[%s3958_s9 + $0x10] sm:$0xff] }
0x214c   : > { %v2074_v36 = vsel %vm2073_vm8, %v2070_v28, %v2072_v34  ;;  %v2313_v61 = vmul.f32 %v3130_v58, %v2290_v43  ;;  %vm2295_vm8 = vcmp.eq.f32.partialorder %v2287_v3, 0.0  ;;  %v2255_v28 = vld [vmem:[%s3960_s11] sm:$0xff]  ;;  %v2376_v34 = vld [vmem:[%s3959_s10 + $0x8] sm:$0xff]  ;;  %v2122_v58 = vld [vmem:[#allocation11 + $0x8] sm:$0xff] }
0x214d   : > { %v2085_v38 = vsel %vm2084_vm11, %v2081_v29, %v2083_v35  ;;  %v2077_v39 = vsel %vm2075_vm12, %v2076_v37, %v2074_v36  ;;  %v2257_v29 = vld [vmem:[%s3960_s11 + $0x10] sm:$0xff]  ;;  %v2348_v35 = vld [vmem:[%s3958_s9 + $0x8] sm:$0xff]  ;;  %v2404_v36 = vld [vmem:[#allocation4] sm:$0x1] }
0x214e   : > { %v2088_v40 = vsel %vm2086_vm13, %v2087_v54, %v2085_v38  ;;  %v2089_v44 = vmax.f32 %v2077_v39, 1e-08  ;;  %v2315_v5 = vsel %vm2314_vm0, %v2290_v43, %v2313_v61  ;;  %v2347_v37 = vld [vmem:[%s3958_s9] sm:$0xff]  ;;  %v2035_v38 = vpop.xlane.xlu1 %2034  ;;  %vm2106_vm13 = vcmask 6144  }
0x214f   : > { %v2090_v42 = vmax.f32 %v2088_v40, 1e-08  ;;  %v2318_v4 = vsel %vm2316_vm1, %v2317_v63, %v2315_v5  ;;  %v2375_v54 = vld [vmem:[%s3959_s10] sm:$0xff]  ;;  %vm2038_vm9 = vcmp.eq.f32.partialorder %v2035_v38, inf  ;;  %vm2040_vm11 = vcmp.eq.f32.partialorder %v2035_v38, 0.0 }
0x2150   : > { %2336 = vperm.xlu0 %3027, %v2318_v4   ;;  %v2123_v61 = vld [vmem:[#allocation11 + $0x10] sm:$0xff] }
0x2151   : > { %v2092_v11 = vrot.slane %v2090_v42, 1 }
0x2152   : > { %v2024_v39 = vpop.xlane.xlu1 %2023 }
0x2153   : > { %v2094_v45 = vmul.f32 %v2092_v11, %v2089_v44  ;;  %v2041_v11 = vand.u32 2147483648, %v2035_v38  ;;  %vm2027_vm10 = vcmp.eq.f32.partialorder %v2024_v39, inf  ;;  %v2030_v46 = vand.u32 2147483648, %v2024_v39 }
0x2154   : > { %vm2029_vm12 = vcmp.eq.f32.partialorder %v2024_v39, 0.0 }
0x2155   : > { %3131 = vrcp.f32 %v2094_v45 }
0x2156   : > { %3133 = vrsqrt.f32 %v2289_v48 }
0x2157   : > { %3135 = vrsqrt.f32 %v2288_v51 }
0x2158   : > { %3137 = vrsqrt.f32 %v2287_v3 }
0x2159   : > { %3139 = vrsqrt.f32 %v2035_v38 }
0x215a   : > { %3141 = vrsqrt.f32 %v2024_v39 }
0x2162   : > { %v3132_v0 = vpop.eup %3131 }
0x2163   : > { %v3134_v9 = vpop.eup %3133  ;;  %v2096_v6 = vmul.f32 %v3132_v0, %v2062_v8 }
0x2164   : > { %v2306_v7 = vmul.f32 %v3134_v9, %v2289_v48  ;;  %v3136_v10 = vpop.eup %3135 }
0x2165   : > { %2109 = vrot.lane.b32.xlu1 %v2096_v6, %s3342_s24  ;;  %v2299_v15 = vmul.f32 %v3136_v10, %v2288_v51  ;;  %v3138_v18 = vpop.eup %3137  ;;  %s2654_s24 = sshll.u32 %s3448_s14, 4  ;;  %s3263_s14 = scalar_lea.vmem %s3262_s16, 32 }
0x2166   : > { %v2308_v12 = vsel %vm2307_vm3, %v2289_v48, %v2306_v7  ;;  %v2292_v22 = vmul.f32 %v3138_v18, %v2287_v3  ;;  %v3140_v40 = vpop.eup %3139  ;;  %s3914_s26 = scalar_lea.hbm %s3964_s15, %s2654_s24  ;;  %p3265_p7 = scmp.lt.s32.totalorder %s3263_s14, %s3257_s28 }
0x2167   : > { %v2311_v14 = vsel %vm2309_vm4, %v2310_v57, %v2308_v12  ;;  %v2301_v17 = vsel %vm2300_vm5, %v2288_v51, %v2299_v15  ;;  %v3142_v41 = vpop.eup %3141  ;;  %v2037_v42 = vmul.f32 %v3140_v40, %v2035_v38 }
0x2168   : > { %2331 = vperm.xlu0 %3027, %v2311_v14   ;;  %v2304_v19 = vsel %vm2302_vm6, %v2303_v13, %v2301_v17  ;;  %v2294_v23 = vsel %vm2293_vm7, %v2287_v3, %v2292_v22  ;;  %v2026_v43 = vmul.f32 %v3142_v41, %v2024_v39  ;;  %p3266_p8 = por %p3265_p7, %p3264_p4 }
0x2169   : > { %2146 = vperm.xlu1 %3028, %v2128_v16   ;;  %v2297_v24 = vsel %vm2295_vm8, %v2296_v20, %v2294_v23  ;;  %v2039_v44 = vsel %vm2038_vm9, %v2035_v38, %v2037_v42 }
0x216a   : > { %v2028_v59 = vsel %vm2027_vm10, %v2024_v39, %v2026_v43  ;;  %v2042_v45 = vsel %vm2040_vm11, %v2041_v11, %v2039_v44  ;;  %p3267_p11 = pnand %p3266_p8, %p3260_p13 }
0x216b   : > { %v2031_v47 = vsel %vm2029_vm12, %v2030_v46, %v2028_v59  ;;  %v2044_v48 = vmax.f32 %v2042_v45, 1e-08 }
0x216c   : > { %2326 = vperm.xlu0 %3027, %v2304_v19   ;;  %v2043_v49 = vmax.f32 %v2031_v47, 1e-08 }
0x216d   : > { %2136 = vperm.xlu1 %3028, %v2126_v21   ;;  %v2046_v50 = vrot.slane %v2044_v48, 1 }
0x216f   : > { %v2048_v51 = vmul.f32 %v2046_v50, %v2043_v49  ;;  %v2403_v49 = vld [vmem:[%s3962_s13] sm:$0x1]  ;;  %v2410_v50 = vlaneseq }
0x2170   : > { %2321 = vperm.xlu0 %3027, %v2297_v24  }
0x2171   : > { %2131 = vperm.xlu1 %3028, %v2125_v25   ;;  %3143 = vrcp.f32 %v2048_v51  ;;  %v2411_v51 = vshrl.u32 %v2410_v50, 7 }
0x2174   : > { %2141 = vperm.xlu0 %3027, %v2127_v26  }
0x2175   : > { %2266 = vperm.xlu1 %3028, %v2256_v27  }
0x2178   : > { %2276 = vperm.xlu0 %3027, %v2258_v60  }
0x2179   : > { %2261 = vperm.xlu1 %3028, %v2255_v28  }
0x217c   : > { %2271 = vperm.xlu0 %3027, %v2257_v29  }
0x217d   : > { %2396 = vperm.xlu1 %3028, %v2378_v30  }
0x217e   : > { %v3144_v52 = vpop.eup %3143 }
0x2180   : > { %2368 = vperm.xlu0 %3027, %v2350_v31  }
0x2181   : > { %2391 = vperm.xlu1 %3028, %v2377_v32  }
0x2184   : > { %2363 = vperm.xlu0 %3027, %v2349_v33  }
0x2185   : > { %2386 = vperm.xlu1 %3028, %v2376_v34  }
0x2188   : > { %2358 = vperm.xlu0 %3027, %v2348_v35  }
0x2189   : > { %2407 = vperm.xlu1 %3028, %v2404_v36  }
0x218c   : > { %2353 = vperm.xlu0 %3027, %v2347_v37  }
0x2190   : > { %2381 = vperm.xlu0 %3027, %v2375_v54  }
0x21ca   : > { %v2016_v53 = vpop.xlane.xlu1 %2015 }
0x21cb   : > { %v2050_v55 = vmul.f32 %v3144_v52, %v2016_v53  ;;  %v2337_v63 = vpop.permute.xlu0 %2336  ;;  %v2412_v52 = vsub.s32 0, %v2411_v51 }
0x21cc   : > { %3145 = vrcp.f32 %v2337_v63 }
0x21cd   : > { %2107 = vst.msk [vmem:[#allocation2] sm:$0x7f] %vm2106_vm13, %v2050_v55 }
0x21d7   : > { %v2110_v56 = vpop.permute.xlu1 %2109 }
0x21d8   : > { %2113 = vst.msk [vmem:[#allocation2] sm:$0x1] %vm2112_vm14, %v2110_v56 }
0x21d9   : > { %v3146_v28 = vpop.eup %3145 }
0x21df   : > { %v2114_v3 = vld [vmem:[#allocation2] sm:$0xff] }
0x21e0   : > { %2920 = vmatprep.subr.mxu1 %v2114_v3 }
0x21e1   : > { %2921 = vmatpush3.msra.mxu1 %v2114_v3 }
0x21e2   : > { %2923 = vmatmul.mubr.msk.f32.vlgmr.msra.gmra.mxu1 %vm2149_vm15, %v2122_v58 }
0x21e3   : > { %2925 = vmatprep.mubr.msk.f32.mxu1 %vm2149_vm15, %v2123_v61  ;;  %v2332_v5 = vpop.permute.xlu0 %2331 }
0x21e4   : > { %v2147_v2 = vpop.permute.xlu1 %2146 }
0x21e6   : > { %2926 = vmatmul.mubr.msk.f32.gmra.mxu1 %vm2149_vm15, %v2124_v62  ;;  %vm2488_vm15 = vcmask 8192  }
0x21e7   : > { %v2327_v0 = vpop.permute.xlu0 %2326 }
0x21e8   : > { %v2137_v9 = vpop.permute.xlu1 %2136  ;;  %3147 = vrcp.f32 %v2327_v0 }
0x21e9   : > { %3149 = vrcp.f32 %v2332_v5 }
0x21eb   : > { %v2322_v8 = vpop.permute.xlu0 %2321 }
0x21ec   : > { %v2132_v7 = vpop.permute.xlu1 %2131  ;;  %3151 = vrcp.f32 %v2322_v8 }
0x21ef   : > { %v2142_v4 = vpop.permute.xlu0 %2141 }
0x21f0   : > { %v2267_v10 = vpop.permute.xlu1 %2266 }
0x21f3   : > { %v2277_v6 = vpop.permute.xlu0 %2276 }
0x21f4   : > { %v2262_v13 = vpop.permute.xlu1 %2261 }
0x21f5   : > { %v3148_v32 = vpop.eup %3147 }
0x21f6   : > { %v3150_v33 = vpop.eup %3149 }
0x21f7   : > { %v2272_v57 = vpop.permute.xlu0 %2271 }
0x21f8   : > { %v2397_v23 = vpop.permute.xlu1 %2396 }
0x21f9   : > { %v3152_v37 = vpop.eup %3151 }
0x21fb   : > { %v2369_v12 = vpop.permute.xlu0 %2368 }
0x21fc   : > { %v2392_v54 = vpop.permute.xlu1 %2391 }
0x21ff   : > { %v2364_v16 = vpop.permute.xlu0 %2363 }
0x2200   : > { %v2387_v45 = vpop.permute.xlu1 %2386 }
0x2203   : > { %v2359_v60 = vpop.permute.xlu0 %2358 }
0x2204   : > { %v2408_v53 = vpop.permute.xlu1 %2407 }
0x2205   : > { %v2413_v55 = vrot.slane %v2408_v53, %v2412_v52 }
0x2207   : > { %v2354_v41 = vpop.permute.xlu0 %2353 }
0x220b   : > { %v2382_v47 = vpop.permute.xlu0 %2381 }
0x22a2   : > { %v2924_v14 = vpop.f32.mrf.mxu1 }
0x22a3   : > { %v2238_v15 = vadd.f32 %v2924_v14, %v2137_v9 }
0x22a4   : > { %v2232_v17 = vpop.f32.mrf.mxu1 }
0x22a5   : > { %v2252_v18 = vmax.f32 %v2238_v15, 0.0  ;;  %v2233_v19 = vadd.f32 %v2232_v17, %v2132_v7 }
0x22a6   : > { %v2927_v20 = vpop.f32.mrf.mxu1 }
0x22a7   : > { %v2251_v21 = vmax.f32 %v2233_v19, 0.0  ;;  %v2248_v22 = vadd.f32 %v2927_v20, %v2147_v2  ;;  %v2280_v25 = vsub.f32 %v2252_v18, %v2267_v10 }
0x22a8   : > { %v2242_v24 = vpop.f32.mrf.mxu1 }
0x22a9   : > { %v2254_v26 = vmax.f32 %v2248_v22, 0.0  ;;  %v2243_v27 = vadd.f32 %v2242_v24, %v2142_v4  ;;  %v2279_v29 = vsub.f32 %v2251_v21, %v2262_v13  ;;  %v2342_v34 = vmul.f32 %v3148_v32, %v2280_v25 }
0x22ab   : > { %v2282_v30 = vsub.f32 %v2254_v26, %v2277_v6  ;;  %v2253_v31 = vmax.f32 %v2243_v27, 0.0  ;;  %v2340_v38 = vmul.f32 %v3152_v37, %v2279_v29  ;;  %v2372_v42 = vmul.f32 %v2359_v60, %v2342_v34 }
0x22ad   : > { %v2346_v35 = vmul.f32 %v3146_v28, %v2282_v30  ;;  %v2281_v36 = vsub.f32 %v2253_v31, %v2272_v57  ;;  %v2371_v11 = vmul.f32 %v2354_v41, %v2340_v38  ;;  %v2400_v46 = vadd.f32 %v2387_v45, %v2372_v42 }
0x22af   : > { %v2374_v39 = vmul.f32 %v2369_v12, %v2346_v35  ;;  %v2344_v40 = vmul.f32 %v3150_v33, %v2281_v36  ;;  %v2399_v48 = vadd.f32 %v2382_v47, %v2371_v11 }
0x22b1   : > { %v2373_v43 = vmul.f32 %v2364_v16, %v2344_v40  ;;  %v2402_v44 = vadd.f32 %v2397_v23, %v2374_v39 }
0x22b3   : > { %2929 = vmatpush3.msra.mxu0 %v2402_v44  ;;  %v2401_v59 = vadd.f32 %v2392_v54, %v2373_v43 }
0x22b4   : > { %2930 = vmatprep.subr.mxu0 %v3337_v1 }
0x22b5   : > { %2931 = vmatpush3.msra.mxu0 %v2401_v59 }
0x22b6   : > { %2932 = vmatprep.subr.mxu0 %v3337_v1 }
0x22b7   : > { %2933 = vmatpush3.msra.mxu0 %v2400_v46 }
0x22b8   : > { %2934 = vmatprep.subr.mxu0 %v3337_v1 }
0x22b9   : > { %2935 = vmatpush3.msra.mxu0 %v2399_v48 }
0x22ba   : > { %2937 = vmatmul.mubr.msk.f32.vlgmr.msra.gmra.mxu0 %vm704_vm2, %v2403_v49 }
0x237a   : > { %v2483_v56 = vpop.f32.mrf.mxu0 }
0x237b   : > { %v2484_v3 = vadd.f32 %v2483_v56, %v2413_v55 }
0x237c   : > { %v2938_v58 = vpop.f32.mrf.mxu0 }
0x237d   : > { %2489 = vst.msk [vmem:[#allocation3] sm:$0x1] %vm2488_vm15, %v2484_v3 }
0x2384   : > { %v2490_v1 = vld [vmem:[#allocation3] sm:$0x1] }
0x2385   : > { %2491 = vst [vmem:[%s547_s20] sm:$0x1] %v2490_v1 }
0x2386   : > { %3270 = shalt.err (!%p3267_p11)
}
0x2387   : > { %s3271_s19 = scalar_lea.hbm %s3914_s26, 16  ;;  %s3275_s20 = scalar_lea.hbm %s3964_s15, 32 }
0x2388   : > { %p3272_p0 = scmp.ne.s32.totalorder %s3914_s26, %s3271_s19  ;;  %p3276_p3 = scmp.lt.s32.totalorder %s3914_s26, %s3964_s15 }
0x2389   : > { %p3277_p10 = scmp.lt.s32.totalorder %s3275_s20, %s3271_s19 }
0x238a   : > { %p3273_p2 = pnand %p3272_p0, %p3465_p5 }
0x238b   : > { %p3278_p9 = por %p3277_p10, %p3276_p3 }
0x238c   : > { %p3274_p1 = pneg %p3273_p2 }
0x238e   : > { %p3279_p12 = pnand %p3278_p9, %p3274_p1 }
0x2390   : > { %3282 = shalt.err (!%p3279_p12)
}
0x2391   : > { %2955 = dma.vmem_to_hbm [thread:$0]  (%p3465_p5), %s2506_s25, 16, %s3914_s26, %s2493_s27  }
0x2392 PF: > { %s3979_s28 = sld [smem:[#allocation18_spill]]  ;;  %p2982_p13 = scmp.ge.s32.totalorder %s3329_s23, 2 }
0x2394   : > { %p2971_p4 = pnand %p2982_p13, %p3469_p6 }
0x2396   : > { %p2972_p7 = pneg %p2971_p4 }
0x2398   : > { %s2517_s16 = sand.u32 1, %s3979_s28  }
0x2399   : > { %s2518_s14 = scalar_lea.sflag [#allocation7], %s2517_s16 }
0x239a   : > { %3312 = dma.done.wait (%p2972_p7), %s2518_s14, 16  }
0x239b   : > { %3314 = vsyncadd (%p2972_p7), %s2518_s14, 4294967280  ;;  %s3981_s23 = sld [smem:[#allocation20_spill]]  ;;  %s3984_s20 = smov %s3321_s21 }
0x239c   : > { %s3982_s19 = sld [smem:[#allocation19_spill]] }
0x239d   : > { %s3983_s22 = sld [smem:[#allocation21_spill]] }
0x23a1   : > { %p30_p8 = scmp.ge.s32.totalorder %s3981_s23, 4  }
0x23a2   : > { %s3985_s21 = smov %s3982_s19 }
0x23a3   :  { %32 = sbr.rel (!%p30_p8) target bundleno = 9 (0x9), region = 132 }
0x23a8   :  { %2522 = vsyncpa [#allocation6], 1 }
0x23a9   :  { %2524 = vsyncpa [#allocation6 + $0x1], 1 }
0x23aa   :  { %2525 = vsyncpa [#allocation9], 1 }
0x23ab   :  { %2526 = vsyncpa [#allocation12], 1 }
0x23ac   :  { %2527 = vsyncpa [#allocation7], 1 }
0x23ad   :  { %2529 = vsyncpa [#allocation7 + $0x1], 1 }

</bundles_post_ra>
